<compile_context>
chip_gen: v7x
topology: tpu7x:2x2x1
jax: 0.10.0
libtpu: 0.0.40
codegen_flags: <defaults>
</compile_context>

<pallas_src>
import functools

import jax
import jax.numpy as jnp
from jax.experimental import pallas as pl
from jax.experimental.pallas import tpu as pltpu

IN_DIM = 1024
HID_DIM = 512
OUT_DIM = 1
OUT_PAD = 128  # lane-dense padded output width (multiple of 128)


def _mlp_kernel(x_ref, w1_ref, b1_ref, w2_ref, b2_ref, o_ref):
    # Layer 1: (TB, 1024) @ (1024, 512), bf16 operands, f32 MXU accumulation.
    h1 = jnp.dot(x_ref[...], w1_ref[...], preferred_element_type=jnp.float32)
    h1 = jnp.maximum(h1 + b1_ref[...], 0.0)  # bias + ReLU in f32

    # Layer 2: (TB, 512) @ (512, 128) — lane-dense padded N; bf16 in, f32 out.
    h1 = h1.astype(jnp.bfloat16)
    out = jnp.dot(h1, w2_ref[...], preferred_element_type=jnp.float32) + b2_ref[...]
    o_ref[...] = out  # raw logits (no activation after hidden2)


def _round_up(n, m):
    return ((n + m - 1) // m) * m


@functools.partial(jax.jit, static_argnames=("tb",))
def mlp_forward(x, w1_t, b1, w2_t, b2, *, tb=256):
    """x: (B, 1024) f32; w1_t: (1024, 512); b1: (512,); w2_t: (512, 1); b2: (1,).

    Weights are stored pre-transposed as (in, out) so the kernel does x @ W.
    Returns (B, 1) f32 logits.
    """
    B = x.shape[0]
    # Batch tile: multiple of 8 (sublane), capped at `tb` (sized for the 256x256 MXU).
    tb = min(tb, _round_up(max(B, 8), 8))
    b_pad = _round_up(B, tb)

    x_p = x.astype(jnp.bfloat16)
    if b_pad != B:
        x_p = jnp.pad(x_p, ((0, b_pad - B), (0, 0)))

    w1_bf = w1_t.astype(jnp.bfloat16)
    b1_2d = b1.reshape(1, HID_DIM).astype(jnp.float32)
    # Zero-pad W2 / b2 to 128 output lanes; padded logits are zero and cropped below.
    w2_bf = jnp.pad(w2_t.astype(jnp.bfloat16), ((0, 0), (0, OUT_PAD - OUT_DIM)))
    b2_2d = jnp.pad(
        b2.reshape(1, OUT_DIM).astype(jnp.float32), ((0, 0), (0, OUT_PAD - OUT_DIM))
    )

    grid = (b_pad // tb,)
    out_p = pl.pallas_call(
        _mlp_kernel,
        out_shape=jax.ShapeDtypeStruct((b_pad, OUT_PAD), jnp.float32),
        grid=grid,
        in_specs=[
            pl.BlockSpec((tb, IN_DIM), lambda i: (i, 0)),        # x tile, per step
            pl.BlockSpec((IN_DIM, HID_DIM), lambda i: (0, 0)),   # W1 resident
            pl.BlockSpec((1, HID_DIM), lambda i: (0, 0)),        # b1 resident
            pl.BlockSpec((HID_DIM, OUT_PAD), lambda i: (0, 0)),  # W2 resident
            pl.BlockSpec((1, OUT_PAD), lambda i: (0, 0)),        # b2 resident
        ],
        out_specs=pl.BlockSpec((tb, OUT_PAD), lambda i: (i, 0)),
        compiler_params=pltpu.CompilerParams(
            # Independent batch tiles -> shard across both TCs on v7x.
            dimension_semantics=("parallel",),
        ),
    )(x_p, w1_bf, b1_2d, w2_bf, b2_2d)

    return out_p[:B, :OUT_DIM]


def init_params(key):
    """Deterministic synthetic params matching nn.Linear(1024,512), nn.Linear(512,1)."""
    k1, k2, k3, k4 = jax.random.split(key, 4)
    lim1 = 1.0 / (IN_DIM ** 0.5)
    lim2 = 1.0 / (HID_DIM ** 0.5)
    w1_t = jax.random.uniform(k1, (IN_DIM, HID_DIM), jnp.float32, -lim1, lim1)
    b1 = jax.random.uniform(k2, (HID_DIM,), jnp.float32, -lim1, lim1)
    w2_t = jax.random.uniform(k3, (HID_DIM, OUT_DIM), jnp.float32, -lim2, lim2)
    b2 = jax.random.uniform(k4, (OUT_DIM,), jnp.float32, -lim2, lim2)
    return w1_t, b1, w2_t, b2


def _reference(x, w1_t, b1, w2_t, b2):
    # Same bf16-input / f32-accumulate recipe as the kernel, in plain JAX.
    xb = x.astype(jnp.bfloat16)
    h1 = jnp.dot(xb, w1_t.astype(jnp.bfloat16), preferred_element_type=jnp.float32) + b1
    h1 = jnp.maximum(h1, 0.0)
    out = jnp.dot(
        h1.astype(jnp.bfloat16), w2_t.astype(jnp.bfloat16),
        preferred_element_type=jnp.float32,
    ) + b2
    return out


if __name__ == "__main__":
    key = jax.random.PRNGKey(0)
    k_x, k_p = jax.random.split(key)

    B = 200  # not a multiple of the tile -> exercises batch padding + crop
    x = jax.random.normal(k_x, (B, IN_DIM), jnp.float32)
    w1_t, b1, w2_t, b2 = init_params(k_p)

    out = mlp_forward(x, w1_t, b1, w2_t, b2, tb=128)  # grid = (2,)
    out = jax.block_until_ready(out)

    assert out.shape == (B, OUT_DIM)
    ref = _reference(x, w1_t, b1, w2_t, b2)
    assert jnp.allclose(out, ref, atol=2e-2, rtol=2e-2), (
        float(jnp.max(jnp.abs(out - ref)))
    )

    print("KERNEL_OK")
</pallas_src>

<mosaic_0001>
module attributes {stable_mosaic.version = 11 : i64} {
  func.func @_mlp_kernel(%arg0: i32, %arg1: memref<128x1024xbf16, #tpu.memory_space<vmem>>, %arg2: memref<1024x512xbf16, #tpu.memory_space<vmem>>, %arg3: memref<1x512xf32, #tpu.memory_space<vmem>>, %arg4: memref<512x128xbf16, #tpu.memory_space<vmem>>, %arg5: memref<1x128xf32, #tpu.memory_space<vmem>>, %arg6: memref<128x128xf32, #tpu.memory_space<vmem>>) attributes {dimension_semantics = [#tpu.dimension_semantics<parallel>], iteration_bounds = array<i64: 2>, scalar_prefetch = 0 : i64, scratch_operands = 0 : i64, tpu.core_type = #tpu.core_type<tc>, window_params = [{transform_indices = @transform_0, window_bounds = array<i64: 128, 1024>}, {pipeline_mode = #tpu.pipeline_mode<synchronous>, transform_indices = @transform_1, window_bounds = array<i64: 1024, 512>}, {pipeline_mode = #tpu.pipeline_mode<synchronous>, transform_indices = @transform_2, window_bounds = array<i64: 1, 512>}, {pipeline_mode = #tpu.pipeline_mode<synchronous>, transform_indices = @transform_3, window_bounds = array<i64: 512, 128>}, {pipeline_mode = #tpu.pipeline_mode<synchronous>, transform_indices = @transform_4, window_bounds = array<i64: 1, 128>}, {transform_indices = @transform_5, window_bounds = array<i64: 128, 128>}]} {
    %c0 = arith.constant 0 : index
    %c0_0 = arith.constant 0 : index
    %0 = vector.load %arg1[%c0, %c0_0] : memref<128x1024xbf16, #tpu.memory_space<vmem>>, vector<128x1024xbf16>
    %c0_1 = arith.constant 0 : index
    %c0_2 = arith.constant 0 : index
    %1 = vector.load %arg2[%c0_1, %c0_2] : memref<1024x512xbf16, #tpu.memory_space<vmem>>, vector<1024x512xbf16>
    %cst = arith.constant dense<0.000000e+00> : vector<128x512xf32>
    %2 = tpu.matmul %0, %1, %cst {dimension_numbers = #tpu.dot_dimension_numbers<[1], [0], [0], [1], [0, 0, 1, 1], [], []>} : vector<128x1024xbf16>, vector<1024x512xbf16>, vector<128x512xf32> -> vector<128x512xf32>
    %c0_3 = arith.constant 0 : index
    %c0_4 = arith.constant 0 : index
    %3 = vector.load %arg3[%c0_3, %c0_4] : memref<1x512xf32, #tpu.memory_space<vmem>>, vector<1x512xf32>
    %4 = vector.broadcast %3 : vector<1x512xf32> to vector<128x512xf32>
    %5 = arith.addf %2, %4 : vector<128x512xf32>
    %cst_5 = arith.constant 0.000000e+00 : f32
    %6 = vector.broadcast %cst_5 : f32 to vector<128x512xf32>
    %7 = arith.maximumf %5, %6 : vector<128x512xf32>
    %8 = arith.truncf %7 : vector<128x512xf32> to vector<128x512xbf16>
    %c0_6 = arith.constant 0 : index
    %c0_7 = arith.constant 0 : index
    %9 = vector.load %arg4[%c0_6, %c0_7] : memref<512x128xbf16, #tpu.memory_space<vmem>>, vector<512x128xbf16>
    %cst_8 = arith.constant dense<0.000000e+00> : vector<128x128xf32>
    %10 = tpu.matmul %8, %9, %cst_8 {dimension_numbers = #tpu.dot_dimension_numbers<[1], [0], [0], [1], [0, 0, 1, 1], [], []>} : vector<128x512xbf16>, vector<512x128xbf16>, vector<128x128xf32> -> vector<128x128xf32>
    %c0_9 = arith.constant 0 : index
    %c0_10 = arith.constant 0 : index
    %11 = vector.load %arg5[%c0_9, %c0_10] : memref<1x128xf32, #tpu.memory_space<vmem>>, vector<1x128xf32>
    %12 = vector.broadcast %11 : vector<1x128xf32> to vector<128x128xf32>
    %13 = arith.addf %10, %12 : vector<128x128xf32>
    %c0_11 = arith.constant 0 : index
    %c0_12 = arith.constant 0 : index
    %14 = vector.load %arg6[%c0_11, %c0_12] : memref<128x128xf32, #tpu.memory_space<vmem>>, vector<128x128xf32>
    tpu.vector_store %arg6[%c0_11, %c0_12], %13 {strides = array<i32>} : memref<128x128xf32, #tpu.memory_space<vmem>>, vector<128x128xf32>,
    return
  }
  func.func @transform_0(%arg0: i32) -> (i32, i32) {
    %c0_i32 = arith.constant 0 : i32
    %c0_i32_0 = arith.constant 0 : i32
    return %arg0, %c0_i32 : i32, i32
  }
  func.func @transform_1(%arg0: i32) -> (i32, i32) {
    %c0_i32 = arith.constant 0 : i32
    %c0_i32_0 = arith.constant 0 : i32
    %c0_i32_1 = arith.constant 0 : i32
    return %c0_i32, %c0_i32_0 : i32, i32
  }
  func.func @transform_2(%arg0: i32) -> (i32, i32) {
    %c0_i32 = arith.constant 0 : i32
    %c0_i32_0 = arith.constant 0 : i32
    %c0_i32_1 = arith.constant 0 : i32
    return %c0_i32, %c0_i32_0 : i32, i32
  }
  func.func @transform_3(%arg0: i32) -> (i32, i32) {
    %c0_i32 = arith.constant 0 : i32
    %c0_i32_0 = arith.constant 0 : i32
    %c0_i32_1 = arith.constant 0 : i32
    return %c0_i32, %c0_i32_0 : i32, i32
  }
  func.func @transform_4(%arg0: i32) -> (i32, i32) {
    %c0_i32 = arith.constant 0 : i32
    %c0_i32_0 = arith.constant 0 : i32
    %c0_i32_1 = arith.constant 0 : i32
    return %c0_i32, %c0_i32_0 : i32, i32
  }
  func.func @transform_5(%arg0: i32) -> (i32, i32) {
    %c0_i32 = arith.constant 0 : i32
    %c0_i32_0 = arith.constant 0 : i32
    return %arg0, %c0_i32 : i32, i32
  }
}

</mosaic_0001>

<bundles_post_ra>
// kernel: mlp_forward.1
= control target key start
LH: loop header
LB: loop body
LE: loop exit
PB: predicated region body
PF: predicated region fallthrough
CT: control target
= control target key end

     0   :  { %s4915_s18 = smov 0   ;;  %s5982_s0 = inlined_call_operand.vmem [shape: bf16[256,1024], index: 0, kind: input, shape index: {}]   ;;  %s5983_s1 = inlined_call_operand.vmem [shape: bf16[1024,512], index: 1, kind: input, shape index: {}]   ;;  %s5984_s2 = inlined_call_operand.vmem [shape: f32[1,512], index: 2, kind: input, shape index: {}]   ;;  %s5985_s3 = inlined_call_operand.vmem [shape: bf16[512,128], index: 3, kind: input, shape index: {}]   ;;  %s5986_s4 = inlined_call_operand.vmem [shape: f32[1,128], index: 4, kind: input, shape index: {}]   ;;  %s5987_s5 = inlined_call_operand.vmem [shape: f32[256,128], index: 5, kind: output, shape index: {}]  }
   0x1 LB: > { %s3703_s19 = sadd.s32 4294967295, %s4883_s18   ;;  %p3707_p0 = scmp.ge.s32.totalorder %s4883_s18, 1  ;;  %s4883_s18 = sphi %s4915_s18, %s15_s18  }
   0x2   : > { %p189_p1 = scmp.lt.s32.totalorder %s4883_s18, 3 }
   0x4   : > { %p190_p2 = pnand %p3707_p0, %p189_p1 }
   0x5   : > { %v4461_v0 = vld [vmem:[%s5983_s1 + $0x4] ss:$16 sps:$4 sm:$0xff] (!%p190_p2)   ;;  %v4463_v1 = vld [vmem:[%s5983_s1 + $0xc] ss:$16 sps:$4 sm:$0xff] (!%p190_p2)   ;;  %v4465_v2 = vld [vmem:[%s5983_s1] ss:$16 sps:$4 sm:$0xff] (!%p190_p2)  }
   0x6   : > { %193 = sbr.rel (%p190_p2) target bundleno = 762 (0x2fa), region = 40  ;;  %2174 = vmatprep.subr.bf16.mxu0 (!%p190_p2), %v4461_v0  ;;  %v4466_v3 = vld [vmem:[%s5983_s1 + $0x8] ss:$16 sps:$4 sm:$0xff] (!%p190_p2)   ;;  %2626 = vmatprep.subr.bf16.mxu1 (!%p190_p2), %v4463_v1  ;;  %v4467_v4 = vld [vmem:[%s5983_s1 + $0x24] ss:$16 sps:$4 sm:$0xff] (!%p190_p2)   ;;  %s3708_s9 = sshll.u32 (!%p190_p2), %s3703_s19, 4 }
   0x7   : > { %2175 = vmatpush1.bf16.msra.mxu0 (!%p190_p2), %v4465_v2  ;;  %2627 = vmatpush1.bf16.msra.mxu1 (!%p190_p2), %v4466_v3  ;;  %v4469_v5 = vld [vmem:[%s5983_s1 + $0x2c] ss:$16 sps:$4 sm:$0xff] (!%p190_p2)   ;;  %v4471_v6 = vld [vmem:[%s5983_s1 + $0x20] ss:$16 sps:$4 sm:$0xff] (!%p190_p2)   ;;  %v4472_v7 = vld [vmem:[%s5983_s1 + $0x28] ss:$16 sps:$4 sm:$0xff] (!%p190_p2)  }
   0x8   : > { %2176 = vmatprep.subr.bf16.mxu0 (!%p190_p2), %v4467_v4  ;;  %2628 = vmatprep.subr.bf16.mxu1 (!%p190_p2), %v4469_v5  ;;  %v4473_v8 = vld [vmem:[%s5983_s1 + $0x44] ss:$16 sps:$4 sm:$0xff] (!%p190_p2)   ;;  %v4475_v9 = vld [vmem:[%s5983_s1 + $0x4c] ss:$16 sps:$4 sm:$0xff] (!%p190_p2)   ;;  %v4477_v10 = vld [vmem:[%s5983_s1 + $0x40] ss:$16 sps:$4 sm:$0xff] (!%p190_p2)  }
   0x9   : > { %v4478_v11 = vld [vmem:[%s5983_s1 + $0x48] ss:$16 sps:$4 sm:$0xff] (!%p190_p2)   ;;  %v4479_v12 = vld [vmem:[%s5983_s1 + $0x64] ss:$16 sps:$4 sm:$0xff] (!%p190_p2)   ;;  %v4481_v13 = vld [vmem:[%s5983_s1 + $0x6c] ss:$16 sps:$4 sm:$0xff] (!%p190_p2)  }
   0xa   : > { %v4483_v14 = vld [vmem:[%s5983_s1 + $0x60] ss:$16 sps:$4 sm:$0xff] (!%p190_p2)   ;;  %v4484_v15 = vld [vmem:[%s5983_s1 + $0x68] ss:$16 sps:$4 sm:$0xff] (!%p190_p2)   ;;  %v4485_v16 = vld [vmem:[%s5983_s1 + $0x84] ss:$16 sps:$4 sm:$0xff] (!%p190_p2)  }
   0xb   : > { %2177 = vmatpush1.bf16.msra.mxu0 (!%p190_p2), %v4471_v6  ;;  %2629 = vmatpush1.bf16.msra.mxu1 (!%p190_p2), %v4472_v7  ;;  %v4487_v17 = vld [vmem:[%s5983_s1 + $0x8c] ss:$16 sps:$4 sm:$0xff] (!%p190_p2)   ;;  %v4489_v18 = vld [vmem:[%s5983_s1 + $0x80] ss:$16 sps:$4 sm:$0xff] (!%p190_p2)   ;;  %v4490_v19 = vld [vmem:[%s5983_s1 + $0x88] ss:$16 sps:$4 sm:$0xff] (!%p190_p2)  }
   0xc   : > { %2178 = vmatprep.subr.bf16.mxu0 (!%p190_p2), %v4473_v8  ;;  %2630 = vmatprep.subr.bf16.mxu1 (!%p190_p2), %v4475_v9  ;;  %v4491_v20 = vld [vmem:[%s5983_s1 + $0xa4] ss:$16 sps:$4 sm:$0xff] (!%p190_p2)   ;;  %v4493_v21 = vld [vmem:[%s5983_s1 + $0xac] ss:$16 sps:$4 sm:$0xff] (!%p190_p2)   ;;  %v4495_v22 = vld [vmem:[%s5983_s1 + $0xa0] ss:$16 sps:$4 sm:$0xff] (!%p190_p2)  }
   0xd   : > { %v4496_v23 = vld [vmem:[%s5983_s1 + $0xa8] ss:$16 sps:$4 sm:$0xff]   ;;  %v4497_v24 = vld [vmem:[%s5983_s1 + $0xc4] ss:$16 sps:$4 sm:$0xff]   ;;  %v4499_v25 = vld [vmem:[%s5983_s1 + $0xcc] ss:$16 sps:$4 sm:$0xff]  }
   0xe   : > { %v4501_v26 = vld [vmem:[%s5983_s1 + $0xc0] ss:$16 sps:$4 sm:$0xff]   ;;  %v4502_v27 = vld [vmem:[%s5983_s1 + $0xc8] ss:$16 sps:$4 sm:$0xff]   ;;  %v4503_v28 = vld [vmem:[%s5983_s1 + $0xe4] ss:$16 sps:$4 sm:$0xff]  }
   0xf   : > { %2179 = vmatpush1.bf16.msra.mxu0 %v4477_v10  ;;  %2631 = vmatpush1.bf16.msra.mxu1 %v4478_v11  ;;  %v4505_v29 = vld [vmem:[%s5983_s1 + $0xec] ss:$16 sps:$4 sm:$0xff]   ;;  %v4507_v30 = vld [vmem:[%s5983_s1 + $0xe0] ss:$16 sps:$4 sm:$0xff]   ;;  %v4508_v31 = vld [vmem:[%s5983_s1 + $0xe8] ss:$16 sps:$4 sm:$0xff]  }
  0x10   : > { %2180 = vmatprep.subr.bf16.mxu0 %v4479_v12  ;;  %2632 = vmatprep.subr.bf16.mxu1 %v4481_v13  ;;  %v4509_v32 = vld [vmem:[%s5983_s1 + $0x104] ss:$16 sps:$4 sm:$0xff]   ;;  %p219_p3 = scmp.lt.s32.totalorder %s3708_s9, 31  ;;  %v4511_v33 = vld [vmem:[%s5983_s1 + $0x10c] ss:$16 sps:$4 sm:$0xff]  }
  0x11   : > { %v4513_v34 = vld [vmem:[%s5983_s1 + $0x100] ss:$16 sps:$4 sm:$0xff]   ;;  %v4514_v35 = vld [vmem:[%s5983_s1 + $0x108] ss:$16 sps:$4 sm:$0xff]   ;;  %v4515_v36 = vld [vmem:[%s5983_s1 + $0x124] ss:$16 sps:$4 sm:$0xff]  }
  0x12   : > { %s5989_s9 = smov (!%p219_p3, %s3708_s9), 31  ;;  %v4517_v37 = vld [vmem:[%s5983_s1 + $0x12c] ss:$16 sps:$4 sm:$0xff]   ;;  %v4519_v38 = vld [vmem:[%s5983_s1 + $0x120] ss:$16 sps:$4 sm:$0xff]  }
  0x13   : > { %2181 = vmatpush1.bf16.msra.mxu0 %v4483_v14  ;;  %2633 = vmatpush1.bf16.msra.mxu1 %v4484_v15  ;;  %v4520_v39 = vld [vmem:[%s5983_s1 + $0x128] ss:$16 sps:$4 sm:$0xff]   ;;  %v4521_v40 = vld [vmem:[%s5983_s1 + $0x144] ss:$16 sps:$4 sm:$0xff]   ;;  %s4068_s8 = sshll.u32 %s5989_s9, 5  ;;  %s3712_s27 = sshll.u32 %s5989_s9, 3 }
  0x14   : > { %2182 = vmatprep.subr.bf16.mxu0 %v4485_v16  ;;  %2634 = vmatprep.subr.bf16.mxu1 %v4487_v17  ;;  %v4523_v41 = vld [vmem:[%s5983_s1 + $0x14c] ss:$16 sps:$4 sm:$0xff]   ;;  %v4525_v42 = vld [vmem:[%s5983_s1 + $0x140] ss:$16 sps:$4 sm:$0xff]   ;;  %v4526_v43 = vld [vmem:[%s5983_s1 + $0x148] ss:$16 sps:$4 sm:$0xff]   ;;  %s5063_s19 = scalar_lea.vmem %s5982_s0, %s4068_s8  ;;  %s5946_s30 = scalar_lea.vmem %s5987_s5, %s3712_s27 }
  0x15   : > { %v4527_v44 = vld [vmem:[%s5983_s1 + $0x164] ss:$16 sps:$4 sm:$0xff]   ;;  %v4529_v45 = vld [vmem:[%s5983_s1 + $0x16c] ss:$16 sps:$4 sm:$0xff]   ;;  %v4531_v48 = vld [vmem:[%s5983_s1 + $0x160] ss:$16 sps:$4 sm:$0xff]  }
  0x16   : > { %v232_v46 = vld [vmem:[%s5063_s19] sm:$0xff]  ;;  %v4532_v49 = vld [vmem:[%s5983_s1 + $0x168] ss:$16 sps:$4 sm:$0xff]   ;;  %v4535_v52 = vld [vmem:[%s5983_s1 + $0x18c] ss:$16 sps:$4 sm:$0xff]  }
  0x17   : > { %2183 = vmatpush1.bf16.msra.mxu0 %v4489_v18  ;;  %2635 = vmatpush1.bf16.msra.mxu1 %v4490_v19  ;;  %v236_v47 = vld [vmem:[%s5063_s19 + $0x20] sm:$0xff]  ;;  %v4538_v54 = vld [vmem:[%s5983_s1 + $0x188] ss:$16 sps:$4 sm:$0xff]   ;;  %v4541_v56 = vld [vmem:[%s5983_s1 + $0x1ac] ss:$16 sps:$4 sm:$0xff]  }
  0x18   : > { %2184 = vmatprep.subr.bf16.mxu0 %v4491_v20  ;;  %2636 = vmatprep.subr.bf16.mxu1 %v4493_v21  ;;  %v3714_v50 = vcombine.high %v232_v46, %v236_v47  ;;  %v4533_v51 = vld [vmem:[%s5983_s1 + $0x184] ss:$16 sps:$4 sm:$0xff]   ;;  %v4537_v53 = vld [vmem:[%s5983_s1 + $0x180] ss:$16 sps:$4 sm:$0xff]   ;;  %v4544_v58 = vld [vmem:[%s5983_s1 + $0x1a8] ss:$16 sps:$4 sm:$0xff]   ;;  %v3713_v7 = vcombine.low %v232_v46, %v236_v47 }
  0x19   : > { %v4539_v55 = vld [vmem:[%s5983_s1 + $0x1a4] ss:$16 sps:$4 sm:$0xff]   ;;  %v4543_v57 = vld [vmem:[%s5983_s1 + $0x1a0] ss:$16 sps:$4 sm:$0xff]   ;;  %v4547_v60 = vld [vmem:[%s5983_s1 + $0x1cc] ss:$16 sps:$4 sm:$0xff]  }
  0x1a   : > { %2206 = vmatprep.mubr.bf16.mxu0 %v3714_v50  ;;  %2658 = vmatprep.mubr.bf16.mxu1 %v3714_v50  ;;  %v4545_v59 = vld [vmem:[%s5983_s1 + $0x1c4] ss:$16 sps:$4 sm:$0xff]   ;;  %v4549_v61 = vld [vmem:[%s5983_s1 + $0x1c0] ss:$16 sps:$4 sm:$0xff]   ;;  %v4550_v62 = vld [vmem:[%s5983_s1 + $0x1c8] ss:$16 sps:$4 sm:$0xff]  }
  0x1b   : > { %2185 = vmatpush1.bf16.msra.mxu0 %v4495_v22  ;;  %2637 = vmatpush1.bf16.msra.mxu1 %v4496_v23  ;;  %v4551_v63 = vld [vmem:[%s5983_s1 + $0x1e4] ss:$16 sps:$4 sm:$0xff]   ;;  %v4553_v0 = vld [vmem:[%s5983_s1 + $0x1ec] ss:$16 sps:$4 sm:$0xff]   ;;  %v4555_v1 = vld [vmem:[%s5983_s1 + $0x1e0] ss:$16 sps:$4 sm:$0xff]  }
  0x1c   : > { %2186 = vmatprep.subr.bf16.mxu0 %v4497_v24  ;;  %2638 = vmatprep.subr.bf16.mxu1 %v4499_v25  ;;  %v4556_v2 = vld [vmem:[%s5983_s1 + $0x1e8] ss:$16 sps:$4 sm:$0xff]   ;;  %v4559_v3 = vld [vmem:[%s5983_s1 + $0x204] ss:$16 sps:$4 sm:$0xff]   ;;  %v4562_v4 = vld [vmem:[%s5983_s1 + $0x20c] ss:$16 sps:$4 sm:$0xff]  }
  0x1d   : > { %v4557_v5 = vld [vmem:[%s5983_s1 + $0x200] ss:$16 sps:$4 sm:$0xff]   ;;  %v4560_v6 = vld [vmem:[%s5983_s1 + $0x208] ss:$16 sps:$4 sm:$0xff]   ;;  %v4565_v10 = vld [vmem:[%s5983_s1 + $0x224] ss:$16 sps:$4 sm:$0xff]  }
  0x1e   : > { %v240_v8 = vld [vmem:[%s5063_s19 + $0x40] sm:$0xff]  ;;  %v4568_v11 = vld [vmem:[%s5983_s1 + $0x22c] ss:$16 sps:$4 sm:$0xff]   ;;  %v4566_v14 = vld [vmem:[%s5983_s1 + $0x228] ss:$16 sps:$4 sm:$0xff]  }
  0x1f   : > { %2187 = vmatpush1.bf16.msra.mxu0 %v4501_v26  ;;  %2639 = vmatpush1.bf16.msra.mxu1 %v4502_v27  ;;  %v244_v9 = vld [vmem:[%s5063_s19 + $0x60] sm:$0xff]  ;;  %v4574_v16 = vld [vmem:[%s5983_s1 + $0x24c] ss:$16 sps:$4 sm:$0xff]   ;;  %v4572_v21 = vld [vmem:[%s5983_s1 + $0x248] ss:$16 sps:$4 sm:$0xff]  }
  0x20   : > { %2188 = vmatprep.subr.bf16.mxu0 %v4503_v28  ;;  %2640 = vmatprep.subr.bf16.mxu1 %v4505_v29  ;;  %v3722_v12 = vcombine.high %v240_v8, %v244_v9  ;;  %v4563_v13 = vld [vmem:[%s5983_s1 + $0x220] ss:$16 sps:$4 sm:$0xff]   ;;  %v4571_v15 = vld [vmem:[%s5983_s1 + $0x244] ss:$16 sps:$4 sm:$0xff]   ;;  %v3721_v18 = vcombine.low %v240_v8, %v244_v9  ;;  %v4580_v23 = vld [vmem:[%s5983_s1 + $0x26c] ss:$16 sps:$4 sm:$0xff]  }
  0x21   : > { %v248_v17 = vld [vmem:[%s5063_s19 + $0x80] sm:$0xff]  ;;  %v4578_v26 = vld [vmem:[%s5983_s1 + $0x268] ss:$16 sps:$4 sm:$0xff]   ;;  %v4586_v28 = vld [vmem:[%s5983_s1 + $0x28c] ss:$16 sps:$4 sm:$0xff]  }
  0x22   : > { %v252_v19 = vld [vmem:[%s5063_s19 + $0xa0] sm:$0xff]  ;;  %v4604_v47 = vld [vmem:[%s5983_s1 + $0x2ec] ss:$16 sps:$4 sm:$0xff]   ;;  %v4602_v50 = vld [vmem:[%s5983_s1 + $0x2e8] ss:$16 sps:$4 sm:$0xff]  }
  0x23   : > { %2189 = vmatpush1.bf16.msra.mxu0 %v4507_v30  ;;  %2641 = vmatpush1.bf16.msra.mxu1 %v4508_v31  ;;  %v4569_v20 = vld [vmem:[%s5983_s1 + $0x240] ss:$16 sps:$4 sm:$0xff]   ;;  %v4577_v22 = vld [vmem:[%s5983_s1 + $0x264] ss:$16 sps:$4 sm:$0xff]   ;;  %v3730_v24 = vcombine.high %v248_v17, %v252_v19  ;;  %v3729_v30 = vcombine.low %v248_v17, %v252_v19  ;;  %v4640_v19 = vld [vmem:[%s5983_s1 + $0x3ac] ss:$16 sps:$4 sm:$0xff]  }
  0x24   : > { %2190 = vmatprep.subr.bf16.mxu0 %v4509_v32  ;;  %2642 = vmatprep.subr.bf16.mxu1 %v4511_v33  ;;  %v4575_v25 = vld [vmem:[%s5983_s1 + $0x260] ss:$16 sps:$4 sm:$0xff]   ;;  %v4583_v27 = vld [vmem:[%s5983_s1 + $0x284] ss:$16 sps:$4 sm:$0xff]   ;;  %v4584_v33 = vld [vmem:[%s5983_s1 + $0x288] ss:$16 sps:$4 sm:$0xff]  }
  0x25   : > { %v256_v29 = vld [vmem:[%s5063_s19 + $0xc0] sm:$0xff] }
  0x26   : > { %v260_v31 = vld [vmem:[%s5063_s19 + $0xe0] sm:$0xff] }
  0x27   : > { %2191 = vmatpush1.bf16.msra.mxu0 %v4513_v34  ;;  %2643 = vmatpush1.bf16.msra.mxu1 %v4514_v35  ;;  %v4581_v32 = vld [vmem:[%s5983_s1 + $0x280] ss:$16 sps:$4 sm:$0xff]   ;;  %v4589_v34 = vld [vmem:[%s5983_s1 + $0x2a4] ss:$16 sps:$4 sm:$0xff]   ;;  %v4592_v35 = vld [vmem:[%s5983_s1 + $0x2ac] ss:$16 sps:$4 sm:$0xff]  }
  0x28   : > { %2192 = vmatprep.subr.bf16.mxu0 %v4515_v36  ;;  %2644 = vmatprep.subr.bf16.mxu1 %v4517_v37  ;;  %v3738_v36 = vcombine.high %v256_v29, %v260_v31  ;;  %v4587_v37 = vld [vmem:[%s5983_s1 + $0x2a0] ss:$16 sps:$4 sm:$0xff]   ;;  %v4601_v46 = vld [vmem:[%s5983_s1 + $0x2e4] ss:$16 sps:$4 sm:$0xff]  }
  0x29   : > { %v4623_v9 = vld [vmem:[%s5983_s1 + $0x360] ss:$16 sps:$4 sm:$0xff]  }
  0x2a   : > { %v292_v17 = vld [vmem:[%s5063_s19 + $0x1e0] sm:$0xff] }
  0x2b   : > { %2193 = vmatpush1.bf16.msra.mxu0 %v4519_v38  ;;  %2645 = vmatpush1.bf16.msra.mxu1 %v4520_v39  ;;  %v4590_v38 = vld [vmem:[%s5983_s1 + $0x2a8] ss:$16 sps:$4 sm:$0xff]   ;;  %v4595_v39 = vld [vmem:[%s5983_s1 + $0x2c4] ss:$16 sps:$4 sm:$0xff]  }
  0x2c   : > { %2194 = vmatprep.subr.bf16.mxu0 %v4521_v40  ;;  %2646 = vmatprep.subr.bf16.mxu1 %v4523_v41  ;;  %v4598_v40 = vld [vmem:[%s5983_s1 + $0x2cc] ss:$16 sps:$4 sm:$0xff]   ;;  %v4593_v41 = vld [vmem:[%s5983_s1 + $0x2c0] ss:$16 sps:$4 sm:$0xff]  }
  0x2f   : > { %2195 = vmatpush1.bf16.msra.mxu0 %v4525_v42  ;;  %2647 = vmatpush1.bf16.msra.mxu1 %v4526_v43  ;;  %v4596_v42 = vld [vmem:[%s5983_s1 + $0x2c8] ss:$16 sps:$4 sm:$0xff]   ;;  %v3737_v43 = vcombine.low %v256_v29, %v260_v31  ;;  %v4652_v31 = vld [vmem:[%s5983_s1 + $0x3ec] ss:$16 sps:$4 sm:$0xff]  }
  0x30   : > { %2196 = vmatprep.subr.bf16.mxu0 %v4527_v44  ;;  %2648 = vmatprep.subr.bf16.mxu1 %v4529_v45  ;;  %v264_v44 = vld [vmem:[%s5063_s19 + $0x100] sm:$0xff]  ;;  %v4644_v29 = vld [vmem:[%s5983_s1 + $0x3c8] ss:$16 sps:$4 sm:$0xff]  }
  0x31   : > { %v268_v45 = vld [vmem:[%s5063_s19 + $0x120] sm:$0xff] }
  0x33   : > { %2197 = vmatpush1.bf16.msra.mxu0 %v4531_v48  ;;  %2649 = vmatpush1.bf16.msra.mxu1 %v4532_v49  ;;  %v3746_v48 = vcombine.high %v264_v44, %v268_v45  ;;  %v4599_v49 = vld [vmem:[%s5983_s1 + $0x2e0] ss:$16 sps:$4 sm:$0xff]  }
  0x34   : > { %2198 = vmatprep.subr.bf16.mxu0 %v4533_v51  ;;  %2650 = vmatprep.subr.bf16.mxu1 %v4535_v52  ;;  %v4607_v51 = vld [vmem:[%s5983_s1 + $0x304] ss:$16 sps:$4 sm:$0xff]   ;;  %v4610_v52 = vld [vmem:[%s5983_s1 + $0x30c] ss:$16 sps:$4 sm:$0xff]  }
  0x37   : > { %2199 = vmatpush1.bf16.msra.mxu0 %v4537_v53  ;;  %2651 = vmatpush1.bf16.msra.mxu1 %v4538_v54  ;;  %v272_v53 = vld [vmem:[%s5063_s19 + $0x140] sm:$0xff]  ;;  %v3745_v54 = vcombine.low %v264_v44, %v268_v45 }
  0x38   : > { %2200 = vmatprep.subr.bf16.mxu0 %v4539_v55  ;;  %2652 = vmatprep.subr.bf16.mxu1 %v4541_v56  ;;  %v276_v55 = vld [vmem:[%s5063_s19 + $0x160] sm:$0xff] }
  0x39   : > { %v4605_v56 = vld [vmem:[%s5983_s1 + $0x300] ss:$16 sps:$4 sm:$0xff]  }
  0x3a   : > { %v4659_v45 = vld [vmem:[%s5983_s1 + $0x420] ss:$16 sps:$4 sm:$0xff]  }
  0x3b   : > { %2201 = vmatpush1.bf16.msra.mxu0 %v4543_v57  ;;  %2653 = vmatpush1.bf16.msra.mxu1 %v4544_v58  ;;  %v4608_v57 = vld [vmem:[%s5983_s1 + $0x308] ss:$16 sps:$4 sm:$0xff]   ;;  %v4613_v58 = vld [vmem:[%s5983_s1 + $0x324] ss:$16 sps:$4 sm:$0xff]  }
  0x3c   : > { %2202 = vmatprep.subr.bf16.mxu0 %v4545_v59  ;;  %2654 = vmatprep.subr.bf16.mxu1 %v4547_v60  ;;  %v4616_v59 = vld [vmem:[%s5983_s1 + $0x32c] ss:$16 sps:$4 sm:$0xff]   ;;  %v3754_v60 = vcombine.high %v272_v53, %v276_v55 }
  0x3f   : > { %2203 = vmatpush1.bf16.msra.mxu0 %v4549_v61  ;;  %2655 = vmatpush1.bf16.msra.mxu1 %v4550_v62  ;;  %v4611_v61 = vld [vmem:[%s5983_s1 + $0x320] ss:$16 sps:$4 sm:$0xff]   ;;  %v4614_v62 = vld [vmem:[%s5983_s1 + $0x328] ss:$16 sps:$4 sm:$0xff]  }
  0x40   : > { %2204 = vmatprep.subr.bf16.mxu0 %v4551_v63  ;;  %2656 = vmatprep.subr.bf16.mxu1 %v4553_v0  ;;  %v4619_v63 = vld [vmem:[%s5983_s1 + $0x344] ss:$16 sps:$4 sm:$0xff]   ;;  %v4622_v0 = vld [vmem:[%s5983_s1 + $0x34c] ss:$16 sps:$4 sm:$0xff]  }
  0x43   : > { %2205 = vmatpush1.bf16.msra.mxu0 %v4555_v1  ;;  %2657 = vmatpush1.bf16.msra.mxu1 %v4556_v2  ;;  %v280_v1 = vld [vmem:[%s5063_s19 + $0x180] sm:$0xff]  ;;  %v3753_v2 = vcombine.low %v272_v53, %v276_v55  ;;  %v253_v53 = vld [vmem:[%s5063_s19 + $0xa8] sm:$0xff] }
  0x44   : > { %2287 = vmatprep.subr.bf16.mxu0 %v4559_v3  ;;  %2739 = vmatprep.subr.bf16.mxu1 %v4562_v4  ;;  %v284_v3 = vld [vmem:[%s5063_s19 + $0x1a0] sm:$0xff]  ;;  %v4676_v55 = vld [vmem:[%s5983_s1 + $0x46c] ss:$16 sps:$4 sm:$0xff]  }
  0x45   : > { %v4617_v4 = vld [vmem:[%s5983_s1 + $0x340] ss:$16 sps:$4 sm:$0xff]   ;;  %v3762_v8 = vcombine.high %v280_v1, %v284_v3 }
  0x46   : > { %2207 = vmatmul.mubr.bf16.vlgmr.msra.gmra.mrb[0].mxu0 %v3713_v7  ;;  %2659 = vmatmul.mubr.bf16.vlgmr.msra.gmra.mrb[0].mxu1 %v3713_v7  ;;  %v4628_v7 = vld [vmem:[%s5983_s1 + $0x36c] ss:$16 sps:$4 sm:$0xff]  }
  0x47   : > { %2288 = vmatpush1.bf16.msra.mxu0 %v4557_v5  ;;  %2740 = vmatpush1.bf16.msra.mxu1 %v4560_v6  ;;  %v4620_v5 = vld [vmem:[%s5983_s1 + $0x348] ss:$16 sps:$4 sm:$0xff]   ;;  %v4625_v6 = vld [vmem:[%s5983_s1 + $0x364] ss:$16 sps:$4 sm:$0xff]  }
  0x48   : > { %2289 = vmatprep.subr.bf16.mxu0 %v4565_v10  ;;  %2741 = vmatprep.subr.bf16.mxu1 %v4568_v11  ;;  %v4626_v10 = vld [vmem:[%s5983_s1 + $0x368] ss:$16 sps:$4 sm:$0xff]   ;;  %v4631_v11 = vld [vmem:[%s5983_s1 + $0x384] ss:$16 sps:$4 sm:$0xff]  }
  0x49   : > { %2216 = vmatprep.mubr.bf16.mxu0 %v3722_v12  ;;  %2668 = vmatprep.mubr.bf16.mxu1 %v3722_v12  ;;  %v4634_v12 = vld [vmem:[%s5983_s1 + $0x38c] ss:$16 sps:$4 sm:$0xff]  }
  0x4b   : > { %2290 = vmatpush1.bf16.msra.mxu0 %v4563_v13  ;;  %2742 = vmatpush1.bf16.msra.mxu1 %v4566_v14  ;;  %v4629_v13 = vld [vmem:[%s5983_s1 + $0x380] ss:$16 sps:$4 sm:$0xff]   ;;  %v4632_v14 = vld [vmem:[%s5983_s1 + $0x388] ss:$16 sps:$4 sm:$0xff]  }
  0x4c   : > { %2291 = vmatprep.subr.bf16.mxu0 %v4571_v15  ;;  %2743 = vmatprep.subr.bf16.mxu1 %v4574_v16  ;;  %v3761_v15 = vcombine.low %v280_v1, %v284_v3  ;;  %v288_v16 = vld [vmem:[%s5063_s19 + $0x1c0] sm:$0xff]  ;;  %v4680_v1 = vld [vmem:[%s5983_s1 + $0x488] ss:$16 sps:$4 sm:$0xff]   ;;  %v4688_v3 = vld [vmem:[%s5983_s1 + $0x4ac] ss:$16 sps:$4 sm:$0xff]  }
  0x4e   : > { %2217 = vmatmul.mubr.bf16.gmra.mrb[4].mxu0 %v3721_v18  ;;  %2669 = vmatmul.mubr.bf16.gmra.mrb[4].mxu1 %v3721_v18  ;;  %v4637_v18 = vld [vmem:[%s5983_s1 + $0x3a4] ss:$16 sps:$4 sm:$0xff]  }
  0x4f   : > { %2292 = vmatpush1.bf16.msra.mxu0 %v4569_v20  ;;  %2744 = vmatpush1.bf16.msra.mxu1 %v4572_v21  ;;  %v3770_v20 = vcombine.high %v288_v16, %v292_v17  ;;  %v4635_v21 = vld [vmem:[%s5983_s1 + $0x3a0] ss:$16 sps:$4 sm:$0xff]  }
  0x50   : > { %2293 = vmatprep.subr.bf16.mxu0 %v4577_v22  ;;  %2745 = vmatprep.subr.bf16.mxu1 %v4580_v23  ;;  %v4638_v22 = vld [vmem:[%s5983_s1 + $0x3a8] ss:$16 sps:$4 sm:$0xff]   ;;  %v4643_v23 = vld [vmem:[%s5983_s1 + $0x3c4] ss:$16 sps:$4 sm:$0xff]  }
  0x51   : > { %2226 = vmatprep.mubr.bf16.mxu0 %v3730_v24  ;;  %2678 = vmatprep.mubr.bf16.mxu1 %v3730_v24  ;;  %v4646_v24 = vld [vmem:[%s5983_s1 + $0x3cc] ss:$16 sps:$4 sm:$0xff]  }
  0x53   : > { %2294 = vmatpush1.bf16.msra.mxu0 %v4575_v25  ;;  %2746 = vmatpush1.bf16.msra.mxu1 %v4578_v26  ;;  %v233_v25 = vld [vmem:[%s5063_s19 + $0x8] sm:$0xff]  ;;  %v3769_v26 = vcombine.low %v288_v16, %v292_v17  ;;  %v4695_v17 = vld [vmem:[%s5983_s1 + $0x4e0] ss:$16 sps:$4 sm:$0xff]  }
  0x54   : > { %2295 = vmatprep.subr.bf16.mxu0 %v4583_v27  ;;  %2747 = vmatprep.subr.bf16.mxu1 %v4586_v28  ;;  %v237_v27 = vld [vmem:[%s5063_s19 + $0x28] sm:$0xff]  ;;  %v4641_v28 = vld [vmem:[%s5983_s1 + $0x3c0] ss:$16 sps:$4 sm:$0xff]  }
  0x56   : > { %2227 = vmatmul.mubr.bf16.gmra.mrb[8].mxu0 %v3729_v30  ;;  %2679 = vmatmul.mubr.bf16.gmra.mrb[8].mxu1 %v3729_v30  ;;  %v4649_v30 = vld [vmem:[%s5983_s1 + $0x3e4] ss:$16 sps:$4 sm:$0xff]  }
  0x57   : > { %2296 = vmatpush1.bf16.msra.mxu0 %v4581_v32  ;;  %2748 = vmatpush1.bf16.msra.mxu1 %v4584_v33  ;;  %v3716_v32 = vcombine.high %v233_v25, %v237_v27  ;;  %v4647_v33 = vld [vmem:[%s5983_s1 + $0x3e0] ss:$16 sps:$4 sm:$0xff]  }
  0x58   : > { %2297 = vmatprep.subr.bf16.mxu0 %v4589_v34  ;;  %2749 = vmatprep.subr.bf16.mxu1 %v4592_v35  ;;  %v4650_v34 = vld [vmem:[%s5983_s1 + $0x3e8] ss:$16 sps:$4 sm:$0xff]   ;;  %v4655_v35 = vld [vmem:[%s5983_s1 + $0x404] ss:$16 sps:$4 sm:$0xff]  }
  0x59   : > { %2236 = vmatprep.mubr.bf16.mxu0 %v3738_v36  ;;  %2688 = vmatprep.mubr.bf16.mxu1 %v3738_v36  ;;  %v4658_v36 = vld [vmem:[%s5983_s1 + $0x40c] ss:$16 sps:$4 sm:$0xff]  }
  0x5b   : > { %2298 = vmatpush1.bf16.msra.mxu0 %v4587_v37  ;;  %2750 = vmatpush1.bf16.msra.mxu1 %v4590_v38  ;;  %v241_v37 = vld [vmem:[%s5063_s19 + $0x48] sm:$0xff]  ;;  %v3715_v38 = vcombine.low %v233_v25, %v237_v27 }
  0x5c   : > { %2299 = vmatprep.subr.bf16.mxu0 %v4595_v39  ;;  %2751 = vmatprep.subr.bf16.mxu1 %v4598_v40  ;;  %v245_v39 = vld [vmem:[%s5063_s19 + $0x68] sm:$0xff]  ;;  %v4653_v40 = vld [vmem:[%s5983_s1 + $0x400] ss:$16 sps:$4 sm:$0xff]  }
  0x5d   : > { %v3724_v44 = vcombine.high %v241_v37, %v245_v39  ;;  %v277_v25 = vld [vmem:[%s5063_s19 + $0x168] sm:$0xff] }
  0x5e   : > { %2237 = vmatmul.mubr.bf16.gmra.mrb[12].mxu0 %v3737_v43  ;;  %2689 = vmatmul.mubr.bf16.gmra.mrb[12].mxu1 %v3737_v43  ;;  %v4664_v43 = vld [vmem:[%s5983_s1 + $0x42c] ss:$16 sps:$4 sm:$0xff]  }
  0x5f   : > { %2300 = vmatpush1.bf16.msra.mxu0 %v4593_v41  ;;  %2752 = vmatpush1.bf16.msra.mxu1 %v4596_v42  ;;  %v4656_v41 = vld [vmem:[%s5983_s1 + $0x408] ss:$16 sps:$4 sm:$0xff]   ;;  %v4661_v42 = vld [vmem:[%s5983_s1 + $0x424] ss:$16 sps:$4 sm:$0xff]   ;;  %v4712_v27 = vld [vmem:[%s5983_s1 + $0x52c] ss:$16 sps:$4 sm:$0xff]  }
  0x60   : > { %2301 = vmatprep.subr.bf16.mxu0 %v4601_v46  ;;  %2753 = vmatprep.subr.bf16.mxu1 %v4604_v47  ;;  %v4662_v46 = vld [vmem:[%s5983_s1 + $0x428] ss:$16 sps:$4 sm:$0xff]   ;;  %v4667_v47 = vld [vmem:[%s5983_s1 + $0x444] ss:$16 sps:$4 sm:$0xff]  }
  0x61   : > { %2246 = vmatprep.mubr.bf16.mxu0 %v3746_v48  ;;  %2698 = vmatprep.mubr.bf16.mxu1 %v3746_v48  ;;  %v4670_v48 = vld [vmem:[%s5983_s1 + $0x44c] ss:$16 sps:$4 sm:$0xff]  }
  0x63   : > { %2302 = vmatpush1.bf16.msra.mxu0 %v4599_v49  ;;  %2754 = vmatpush1.bf16.msra.mxu1 %v4602_v50  ;;  %v4665_v49 = vld [vmem:[%s5983_s1 + $0x440] ss:$16 sps:$4 sm:$0xff]   ;;  %v4668_v50 = vld [vmem:[%s5983_s1 + $0x448] ss:$16 sps:$4 sm:$0xff]  }
  0x64   : > { %2303 = vmatprep.subr.bf16.mxu0 %v4607_v51  ;;  %2755 = vmatprep.subr.bf16.mxu1 %v4610_v52  ;;  %v3723_v51 = vcombine.low %v241_v37, %v245_v39  ;;  %v249_v52 = vld [vmem:[%s5063_s19 + $0x88] sm:$0xff] }
  0x65   : > { %v4716_v37 = vld [vmem:[%s5983_s1 + $0x548] ss:$16 sps:$4 sm:$0xff]   ;;  %v4724_v39 = vld [vmem:[%s5983_s1 + $0x56c] ss:$16 sps:$4 sm:$0xff]  }
  0x66   : > { %2247 = vmatmul.mubr.bf16.gmra.mrb[16].mxu0 %v3745_v54  ;;  %2699 = vmatmul.mubr.bf16.gmra.mrb[16].mxu1 %v3745_v54  ;;  %v4673_v54 = vld [vmem:[%s5983_s1 + $0x464] ss:$16 sps:$4 sm:$0xff]  }
  0x67   : > { %2304 = vmatpush1.bf16.msra.mxu0 %v4605_v56  ;;  %2756 = vmatpush1.bf16.msra.mxu1 %v4608_v57  ;;  %v3732_v56 = vcombine.high %v249_v52, %v253_v53  ;;  %v4671_v57 = vld [vmem:[%s5983_s1 + $0x460] ss:$16 sps:$4 sm:$0xff]  }
  0x68   : > { %2305 = vmatprep.subr.bf16.mxu0 %v4613_v58  ;;  %2757 = vmatprep.subr.bf16.mxu1 %v4616_v59  ;;  %v4674_v58 = vld [vmem:[%s5983_s1 + $0x468] ss:$16 sps:$4 sm:$0xff]   ;;  %v4679_v59 = vld [vmem:[%s5983_s1 + $0x484] ss:$16 sps:$4 sm:$0xff]  }
  0x69   : > { %2256 = vmatprep.mubr.bf16.mxu0 %v3754_v60  ;;  %2708 = vmatprep.mubr.bf16.mxu1 %v3754_v60  ;;  %v4682_v60 = vld [vmem:[%s5983_s1 + $0x48c] ss:$16 sps:$4 sm:$0xff]  }
  0x6b   : > { %2306 = vmatpush1.bf16.msra.mxu0 %v4611_v61  ;;  %2758 = vmatpush1.bf16.msra.mxu1 %v4614_v62  ;;  %v257_v61 = vld [vmem:[%s5063_s19 + $0xc8] sm:$0xff]  ;;  %v3731_v62 = vcombine.low %v249_v52, %v253_v53  ;;  %v4731_v53 = vld [vmem:[%s5983_s1 + $0x5a0] ss:$16 sps:$4 sm:$0xff]  }
  0x6c   : > { %2307 = vmatprep.subr.bf16.mxu0 %v4619_v63  ;;  %2759 = vmatprep.subr.bf16.mxu1 %v4622_v0  ;;  %v261_v63 = vld [vmem:[%s5063_s19 + $0xe8] sm:$0xff]  ;;  %v4677_v0 = vld [vmem:[%s5983_s1 + $0x480] ss:$16 sps:$4 sm:$0xff]  }
  0x6e   : > { %2257 = vmatmul.mubr.bf16.gmra.mrb[20].mxu0 %v3753_v2  ;;  %2709 = vmatmul.mubr.bf16.gmra.mrb[20].mxu1 %v3753_v2  ;;  %v4685_v2 = vld [vmem:[%s5983_s1 + $0x4a4] ss:$16 sps:$4 sm:$0xff]  }
  0x6f   : > { %2308 = vmatpush1.bf16.msra.mxu0 %v4617_v4  ;;  %2760 = vmatpush1.bf16.msra.mxu1 %v4620_v5  ;;  %v3740_v4 = vcombine.high %v257_v61, %v261_v63  ;;  %v4683_v5 = vld [vmem:[%s5983_s1 + $0x4a0] ss:$16 sps:$4 sm:$0xff]  }
  0x70   : > { %2309 = vmatprep.subr.bf16.mxu0 %v4625_v6  ;;  %2761 = vmatprep.subr.bf16.mxu1 %v4628_v7  ;;  %v4686_v6 = vld [vmem:[%s5983_s1 + $0x4a8] ss:$16 sps:$4 sm:$0xff]   ;;  %v4691_v7 = vld [vmem:[%s5983_s1 + $0x4c4] ss:$16 sps:$4 sm:$0xff]  }
  0x71   : > { %2266 = vmatprep.mubr.bf16.mxu0 %v3762_v8  ;;  %2718 = vmatprep.mubr.bf16.mxu1 %v3762_v8  ;;  %v4694_v8 = vld [vmem:[%s5983_s1 + $0x4cc] ss:$16 sps:$4 sm:$0xff]  }
  0x73   : > { %2310 = vmatpush1.bf16.msra.mxu0 %v4623_v9  ;;  %2762 = vmatpush1.bf16.msra.mxu1 %v4626_v10  ;;  %v265_v9 = vld [vmem:[%s5063_s19 + $0x108] sm:$0xff]  ;;  %v3739_v10 = vcombine.low %v257_v61, %v261_v63  ;;  %v238_v61 = vld [vmem:[%s5063_s19 + $0x30] sm:$0xff] }
  0x74   : > { %2311 = vmatprep.subr.bf16.mxu0 %v4631_v11  ;;  %2763 = vmatprep.subr.bf16.mxu1 %v4634_v12  ;;  %v269_v11 = vld [vmem:[%s5063_s19 + $0x128] sm:$0xff]  ;;  %v4689_v12 = vld [vmem:[%s5983_s1 + $0x4c0] ss:$16 sps:$4 sm:$0xff]  }
  0x75   : > { %v3748_v16 = vcombine.high %v265_v9, %v269_v11  ;;  %v4748_v63 = vld [vmem:[%s5983_s1 + $0x5ec] ss:$16 sps:$4 sm:$0xff]  }
  0x76   : > { %2267 = vmatmul.mubr.bf16.gmra.mrb[24].mxu0 %v3761_v15  ;;  %2719 = vmatmul.mubr.bf16.gmra.mrb[24].mxu1 %v3761_v15  ;;  %v4700_v15 = vld [vmem:[%s5983_s1 + $0x4ec] ss:$16 sps:$4 sm:$0xff]  }
  0x77   : > { %2312 = vmatpush1.bf16.msra.mxu0 %v4629_v13  ;;  %2764 = vmatpush1.bf16.msra.mxu1 %v4632_v14  ;;  %v4692_v13 = vld [vmem:[%s5983_s1 + $0x4c8] ss:$16 sps:$4 sm:$0xff]   ;;  %v4697_v14 = vld [vmem:[%s5983_s1 + $0x4e4] ss:$16 sps:$4 sm:$0xff]  }
  0x78   : > { %2313 = vmatprep.subr.bf16.mxu0 %v4637_v18  ;;  %2765 = vmatprep.subr.bf16.mxu1 %v4640_v19  ;;  %v4698_v18 = vld [vmem:[%s5983_s1 + $0x4e8] ss:$16 sps:$4 sm:$0xff]   ;;  %v4703_v19 = vld [vmem:[%s5983_s1 + $0x504] ss:$16 sps:$4 sm:$0xff]  }
  0x79   : > { %2276 = vmatprep.mubr.bf16.mxu0 %v3770_v20  ;;  %2728 = vmatprep.mubr.bf16.mxu1 %v3770_v20  ;;  %v4706_v20 = vld [vmem:[%s5983_s1 + $0x50c] ss:$16 sps:$4 sm:$0xff]  }
  0x7b   : > { %2314 = vmatpush1.bf16.msra.mxu0 %v4635_v21  ;;  %2766 = vmatpush1.bf16.msra.mxu1 %v4638_v22  ;;  %v4701_v21 = vld [vmem:[%s5983_s1 + $0x500] ss:$16 sps:$4 sm:$0xff]   ;;  %v4704_v22 = vld [vmem:[%s5983_s1 + $0x508] ss:$16 sps:$4 sm:$0xff]  }
  0x7c   : > { %2315 = vmatprep.subr.bf16.mxu0 %v4643_v23  ;;  %2767 = vmatprep.subr.bf16.mxu1 %v4646_v24  ;;  %v3747_v23 = vcombine.low %v265_v9, %v269_v11  ;;  %v273_v24 = vld [vmem:[%s5063_s19 + $0x148] sm:$0xff]  ;;  %v246_v9 = vld [vmem:[%s5063_s19 + $0x70] sm:$0xff] }
  0x7d   : > { %v4760_v11 = vld [vmem:[%s5983_s1 + $0x62c] ss:$16 sps:$4 sm:$0xff]  }
  0x7e   : > { %2277 = vmatmul.mubr.bf16.gmra.mrb[28].mxu0 %v3769_v26  ;;  %2729 = vmatmul.mubr.bf16.gmra.mrb[28].mxu1 %v3769_v26  ;;  %v4709_v26 = vld [vmem:[%s5983_s1 + $0x524] ss:$16 sps:$4 sm:$0xff]  }
  0x7f   : > { %2316 = vmatpush1.bf16.msra.mxu0 %v4641_v28  ;;  %2768 = vmatpush1.bf16.msra.mxu1 %v4644_v29  ;;  %v3756_v28 = vcombine.high %v273_v24, %v277_v25  ;;  %v4707_v29 = vld [vmem:[%s5983_s1 + $0x520] ss:$16 sps:$4 sm:$0xff]  }
  0x80   : > { %2317 = vmatprep.subr.bf16.mxu0 %v4649_v30  ;;  %2769 = vmatprep.subr.bf16.mxu1 %v4652_v31  ;;  %v4710_v30 = vld [vmem:[%s5983_s1 + $0x528] ss:$16 sps:$4 sm:$0xff]   ;;  %v4715_v31 = vld [vmem:[%s5983_s1 + $0x544] ss:$16 sps:$4 sm:$0xff]  }
  0x81   : > { %2319 = vmatprep.mubr.bf16.mxu0 %v3716_v32  ;;  %2771 = vmatprep.mubr.bf16.mxu1 %v3716_v32  ;;  %v4718_v32 = vld [vmem:[%s5983_s1 + $0x54c] ss:$16 sps:$4 sm:$0xff]  }
  0x83   : > { %2318 = vmatpush1.bf16.msra.mxu0 %v4647_v33  ;;  %2770 = vmatpush1.bf16.msra.mxu1 %v4650_v34  ;;  %v281_v33 = vld [vmem:[%s5063_s19 + $0x188] sm:$0xff]  ;;  %v3755_v34 = vcombine.low %v273_v24, %v277_v25  ;;  %v4767_v24 = vld [vmem:[%s5983_s1 + $0x660] ss:$16 sps:$4 sm:$0xff]  }
  0x84   : > { %2400 = vmatprep.subr.bf16.mxu0 %v4655_v35  ;;  %2852 = vmatprep.subr.bf16.mxu1 %v4658_v36  ;;  %v285_v35 = vld [vmem:[%s5063_s19 + $0x1a8] sm:$0xff]  ;;  %v4713_v36 = vld [vmem:[%s5983_s1 + $0x540] ss:$16 sps:$4 sm:$0xff]  }
  0x86   : > { %2320 = vmatmul.mubr.bf16.vlgmr.msra.gmra.mrb[0].mxu0 %v3715_v38  ;;  %2772 = vmatmul.mubr.bf16.vlgmr.msra.gmra.mrb[0].mxu1 %v3715_v38  ;;  %v4721_v38 = vld [vmem:[%s5983_s1 + $0x564] ss:$16 sps:$4 sm:$0xff]  }
  0x87   : > { %2401 = vmatpush1.bf16.msra.mxu0 %v4653_v40  ;;  %2853 = vmatpush1.bf16.msra.mxu1 %v4656_v41  ;;  %v3764_v40 = vcombine.high %v281_v33, %v285_v35  ;;  %v4719_v41 = vld [vmem:[%s5983_s1 + $0x560] ss:$16 sps:$4 sm:$0xff]  }
  0x88   : > { %2402 = vmatprep.subr.bf16.mxu0 %v4661_v42  ;;  %2854 = vmatprep.subr.bf16.mxu1 %v4664_v43  ;;  %v4722_v42 = vld [vmem:[%s5983_s1 + $0x568] ss:$16 sps:$4 sm:$0xff]   ;;  %v4727_v43 = vld [vmem:[%s5983_s1 + $0x584] ss:$16 sps:$4 sm:$0xff]  }
  0x89   : > { %2329 = vmatprep.mubr.bf16.mxu0 %v3724_v44  ;;  %2781 = vmatprep.mubr.bf16.mxu1 %v3724_v44  ;;  %v4730_v44 = vld [vmem:[%s5983_s1 + $0x58c] ss:$16 sps:$4 sm:$0xff]  }
  0x8b   : > { %2403 = vmatpush1.bf16.msra.mxu0 %v4659_v45  ;;  %2855 = vmatpush1.bf16.msra.mxu1 %v4662_v46  ;;  %v289_v45 = vld [vmem:[%s5063_s19 + $0x1c8] sm:$0xff]  ;;  %v3763_v46 = vcombine.low %v281_v33, %v285_v35  ;;  %v262_v33 = vld [vmem:[%s5063_s19 + $0xf0] sm:$0xff] }
  0x8c   : > { %2404 = vmatprep.subr.bf16.mxu0 %v4667_v47  ;;  %2856 = vmatprep.subr.bf16.mxu1 %v4670_v48  ;;  %v293_v47 = vld [vmem:[%s5063_s19 + $0x1e8] sm:$0xff]  ;;  %v4725_v48 = vld [vmem:[%s5983_s1 + $0x580] ss:$16 sps:$4 sm:$0xff]  }
  0x8d   : > { %v3772_v52 = vcombine.high %v289_v45, %v293_v47  ;;  %v4784_v35 = vld [vmem:[%s5983_s1 + $0x6ac] ss:$16 sps:$4 sm:$0xff]  }
  0x8e   : > { %2330 = vmatmul.mubr.bf16.gmra.mrb[4].mxu0 %v3723_v51  ;;  %2782 = vmatmul.mubr.bf16.gmra.mrb[4].mxu1 %v3723_v51  ;;  %v4736_v51 = vld [vmem:[%s5983_s1 + $0x5ac] ss:$16 sps:$4 sm:$0xff]  }
  0x8f   : > { %2405 = vmatpush1.bf16.msra.mxu0 %v4665_v49  ;;  %2857 = vmatpush1.bf16.msra.mxu1 %v4668_v50  ;;  %v4728_v49 = vld [vmem:[%s5983_s1 + $0x588] ss:$16 sps:$4 sm:$0xff]   ;;  %v4733_v50 = vld [vmem:[%s5983_s1 + $0x5a4] ss:$16 sps:$4 sm:$0xff]  }
  0x90   : > { %2406 = vmatprep.subr.bf16.mxu0 %v4673_v54  ;;  %2858 = vmatprep.subr.bf16.mxu1 %v4676_v55  ;;  %v4734_v54 = vld [vmem:[%s5983_s1 + $0x5a8] ss:$16 sps:$4 sm:$0xff]   ;;  %v4739_v55 = vld [vmem:[%s5983_s1 + $0x5c4] ss:$16 sps:$4 sm:$0xff]  }
  0x91   : > { %2339 = vmatprep.mubr.bf16.mxu0 %v3732_v56  ;;  %2791 = vmatprep.mubr.bf16.mxu1 %v3732_v56  ;;  %v4742_v56 = vld [vmem:[%s5983_s1 + $0x5cc] ss:$16 sps:$4 sm:$0xff]  }
  0x93   : > { %2407 = vmatpush1.bf16.msra.mxu0 %v4671_v57  ;;  %2859 = vmatpush1.bf16.msra.mxu1 %v4674_v58  ;;  %v4737_v57 = vld [vmem:[%s5983_s1 + $0x5c0] ss:$16 sps:$4 sm:$0xff]   ;;  %v4740_v58 = vld [vmem:[%s5983_s1 + $0x5c8] ss:$16 sps:$4 sm:$0xff]  }
  0x94   : > { %2408 = vmatprep.subr.bf16.mxu0 %v4679_v59  ;;  %2860 = vmatprep.subr.bf16.mxu1 %v4682_v60  ;;  %v3771_v59 = vcombine.low %v289_v45, %v293_v47  ;;  %v234_v60 = vld [vmem:[%s5063_s19 + $0x10] sm:$0xff]  ;;  %v4796_v47 = vld [vmem:[%s5983_s1 + $0x6ec] ss:$16 sps:$4 sm:$0xff]  }
  0x95   : > { %v270_v45 = vld [vmem:[%s5063_s19 + $0x130] sm:$0xff] }
  0x96   : > { %2340 = vmatmul.mubr.bf16.gmra.mrb[8].mxu0 %v3731_v62  ;;  %2792 = vmatmul.mubr.bf16.gmra.mrb[8].mxu1 %v3731_v62  ;;  %v4745_v62 = vld [vmem:[%s5983_s1 + $0x5e4] ss:$16 sps:$4 sm:$0xff]  }
  0x97   : > { %2409 = vmatpush1.bf16.msra.mxu0 %v4677_v0  ;;  %2861 = vmatpush1.bf16.msra.mxu1 %v4680_v1  ;;  %v3718_v0 = vcombine.high %v234_v60, %v238_v61  ;;  %v4743_v1 = vld [vmem:[%s5983_s1 + $0x5e0] ss:$16 sps:$4 sm:$0xff]  }
  0x98   : > { %2410 = vmatprep.subr.bf16.mxu0 %v4685_v2  ;;  %2862 = vmatprep.subr.bf16.mxu1 %v4688_v3  ;;  %v4746_v2 = vld [vmem:[%s5983_s1 + $0x5e8] ss:$16 sps:$4 sm:$0xff]   ;;  %v4751_v3 = vld [vmem:[%s5983_s1 + $0x604] ss:$16 sps:$4 sm:$0xff]  }
  0x99   : > { %2349 = vmatprep.mubr.bf16.mxu0 %v3740_v4  ;;  %2801 = vmatprep.mubr.bf16.mxu1 %v3740_v4  ;;  %v4754_v4 = vld [vmem:[%s5983_s1 + $0x60c] ss:$16 sps:$4 sm:$0xff]  }
  0x9b   : > { %2411 = vmatpush1.bf16.msra.mxu0 %v4683_v5  ;;  %2863 = vmatpush1.bf16.msra.mxu1 %v4686_v6  ;;  %v4749_v5 = vld [vmem:[%s5983_s1 + $0x600] ss:$16 sps:$4 sm:$0xff]   ;;  %v3717_v6 = vcombine.low %v234_v60, %v238_v61 }
  0x9c   : > { %2412 = vmatprep.subr.bf16.mxu0 %v4691_v7  ;;  %2864 = vmatprep.subr.bf16.mxu1 %v4694_v8  ;;  %v4752_v7 = vld [vmem:[%s5983_s1 + $0x608] ss:$16 sps:$4 sm:$0xff]   ;;  %v242_v8 = vld [vmem:[%s5063_s19 + $0x50] sm:$0xff] }
  0x9d   : > { %v4803_v61 = vld [vmem:[%s5983_s1 + $0x720] ss:$16 sps:$4 sm:$0xff]  }
  0x9e   : > { %2350 = vmatmul.mubr.bf16.gmra.mrb[12].mxu0 %v3739_v10  ;;  %2802 = vmatmul.mubr.bf16.gmra.mrb[12].mxu1 %v3739_v10  ;;  %v4757_v10 = vld [vmem:[%s5983_s1 + $0x624] ss:$16 sps:$4 sm:$0xff]  }
  0x9f   : > { %2413 = vmatpush1.bf16.msra.mxu0 %v4689_v12  ;;  %2865 = vmatpush1.bf16.msra.mxu1 %v4692_v13  ;;  %v4755_v12 = vld [vmem:[%s5983_s1 + $0x620] ss:$16 sps:$4 sm:$0xff]   ;;  %v3726_v13 = vcombine.high %v242_v8, %v246_v9 }
  0xa0   : > { %2414 = vmatprep.subr.bf16.mxu0 %v4697_v14  ;;  %2866 = vmatprep.subr.bf16.mxu1 %v4700_v15  ;;  %v4758_v14 = vld [vmem:[%s5983_s1 + $0x628] ss:$16 sps:$4 sm:$0xff]   ;;  %v4763_v15 = vld [vmem:[%s5983_s1 + $0x644] ss:$16 sps:$4 sm:$0xff]  }
  0xa1   : > { %2359 = vmatprep.mubr.bf16.mxu0 %v3748_v16  ;;  %2811 = vmatprep.mubr.bf16.mxu1 %v3748_v16  ;;  %v4766_v16 = vld [vmem:[%s5983_s1 + $0x64c] ss:$16 sps:$4 sm:$0xff]  }
  0xa3   : > { %2415 = vmatpush1.bf16.msra.mxu0 %v4695_v17  ;;  %2867 = vmatpush1.bf16.msra.mxu1 %v4698_v18  ;;  %v4761_v17 = vld [vmem:[%s5983_s1 + $0x640] ss:$16 sps:$4 sm:$0xff]   ;;  %v4764_v18 = vld [vmem:[%s5983_s1 + $0x648] ss:$16 sps:$4 sm:$0xff]  }
  0xa4   : > { %2416 = vmatprep.subr.bf16.mxu0 %v4703_v19  ;;  %2868 = vmatprep.subr.bf16.mxu1 %v4706_v20  ;;  %v250_v19 = vld [vmem:[%s5063_s19 + $0x90] sm:$0xff]  ;;  %v3725_v20 = vcombine.low %v242_v8, %v246_v9 }
  0xa5   : > { %v4815_v9 = vld [vmem:[%s5983_s1 + $0x760] ss:$16 sps:$4 sm:$0xff]  }
  0xa6   : > { %2360 = vmatmul.mubr.bf16.gmra.mrb[16].mxu0 %v3747_v23  ;;  %2812 = vmatmul.mubr.bf16.gmra.mrb[16].mxu1 %v3747_v23  ;;  %v4772_v23 = vld [vmem:[%s5983_s1 + $0x66c] ss:$16 sps:$4 sm:$0xff]  }
  0xa7   : > { %2417 = vmatpush1.bf16.msra.mxu0 %v4701_v21  ;;  %2869 = vmatpush1.bf16.msra.mxu1 %v4704_v22  ;;  %v254_v21 = vld [vmem:[%s5063_s19 + $0xb0] sm:$0xff] }
  0xa8   : > { %2418 = vmatprep.subr.bf16.mxu0 %v4709_v26  ;;  %2870 = vmatprep.subr.bf16.mxu1 %v4712_v27  ;;  %v4769_v22 = vld [vmem:[%s5983_s1 + $0x664] ss:$16 sps:$4 sm:$0xff]   ;;  %v3734_v25 = vcombine.high %v250_v19, %v254_v21  ;;  %v4770_v26 = vld [vmem:[%s5983_s1 + $0x668] ss:$16 sps:$4 sm:$0xff]  }
  0xa9   : > { %2369 = vmatprep.mubr.bf16.mxu0 %v3756_v28  ;;  %2821 = vmatprep.mubr.bf16.mxu1 %v3756_v28  ;;  %v4775_v27 = vld [vmem:[%s5983_s1 + $0x684] ss:$16 sps:$4 sm:$0xff]   ;;  %v4778_v28 = vld [vmem:[%s5983_s1 + $0x68c] ss:$16 sps:$4 sm:$0xff]  }
  0xab   : > { %2419 = vmatpush1.bf16.msra.mxu0 %v4707_v29  ;;  %2871 = vmatpush1.bf16.msra.mxu1 %v4710_v30  ;;  %v4773_v29 = vld [vmem:[%s5983_s1 + $0x680] ss:$16 sps:$4 sm:$0xff]   ;;  %v4776_v30 = vld [vmem:[%s5983_s1 + $0x688] ss:$16 sps:$4 sm:$0xff]  }
  0xac   : > { %2420 = vmatprep.subr.bf16.mxu0 %v4715_v31  ;;  %2872 = vmatprep.subr.bf16.mxu1 %v4718_v32  ;;  %v258_v31 = vld [vmem:[%s5063_s19 + $0xd0] sm:$0xff]  ;;  %v3733_v32 = vcombine.low %v250_v19, %v254_v21  ;;  %v4832_v19 = vld [vmem:[%s5983_s1 + $0x7ac] ss:$16 sps:$4 sm:$0xff]  }
  0xad   : > { %v4827_v21 = vld [vmem:[%s5983_s1 + $0x7a0] ss:$16 sps:$4 sm:$0xff]  }
  0xae   : > { %2370 = vmatmul.mubr.bf16.gmra.mrb[20].mxu0 %v3755_v34  ;;  %2822 = vmatmul.mubr.bf16.gmra.mrb[20].mxu1 %v3755_v34  ;;  %v4781_v34 = vld [vmem:[%s5983_s1 + $0x6a4] ss:$16 sps:$4 sm:$0xff]  }
  0xaf   : > { %2421 = vmatpush1.bf16.msra.mxu0 %v4713_v36  ;;  %2873 = vmatpush1.bf16.msra.mxu1 %v4716_v37  ;;  %v4779_v36 = vld [vmem:[%s5983_s1 + $0x6a0] ss:$16 sps:$4 sm:$0xff]   ;;  %v3742_v37 = vcombine.high %v258_v31, %v262_v33 }
  0xb0   : > { %2422 = vmatprep.subr.bf16.mxu0 %v4721_v38  ;;  %2874 = vmatprep.subr.bf16.mxu1 %v4724_v39  ;;  %v4782_v38 = vld [vmem:[%s5983_s1 + $0x6a8] ss:$16 sps:$4 sm:$0xff]   ;;  %v4787_v39 = vld [vmem:[%s5983_s1 + $0x6c4] ss:$16 sps:$4 sm:$0xff]  }
  0xb1   : > { %2379 = vmatprep.mubr.bf16.mxu0 %v3764_v40  ;;  %2831 = vmatprep.mubr.bf16.mxu1 %v3764_v40  ;;  %v4790_v40 = vld [vmem:[%s5983_s1 + $0x6cc] ss:$16 sps:$4 sm:$0xff]  }
  0xb3   : > { %2423 = vmatpush1.bf16.msra.mxu0 %v4719_v41  ;;  %2875 = vmatpush1.bf16.msra.mxu1 %v4722_v42  ;;  %v4785_v41 = vld [vmem:[%s5983_s1 + $0x6c0] ss:$16 sps:$4 sm:$0xff]   ;;  %v4788_v42 = vld [vmem:[%s5983_s1 + $0x6c8] ss:$16 sps:$4 sm:$0xff]  }
  0xb4   : > { %2424 = vmatprep.subr.bf16.mxu0 %v4727_v43  ;;  %2876 = vmatprep.subr.bf16.mxu1 %v4730_v44  ;;  %v266_v43 = vld [vmem:[%s5063_s19 + $0x110] sm:$0xff]  ;;  %v3741_v44 = vcombine.low %v258_v31, %v262_v33  ;;  %v4844_v31 = vld [vmem:[%s5983_s1 + $0x7ec] ss:$16 sps:$4 sm:$0xff]  }
  0xb5   : > { %v4839_v33 = vld [vmem:[%s5983_s1 + $0x7e0] ss:$16 sps:$4 sm:$0xff]  }
  0xb6   : > { %2380 = vmatmul.mubr.bf16.gmra.mrb[24].mxu0 %v3763_v46  ;;  %2832 = vmatmul.mubr.bf16.gmra.mrb[24].mxu1 %v3763_v46  ;;  %v4793_v46 = vld [vmem:[%s5983_s1 + $0x6e4] ss:$16 sps:$4 sm:$0xff]  }
  0xb7   : > { %2425 = vmatpush1.bf16.msra.mxu0 %v4725_v48  ;;  %2877 = vmatpush1.bf16.msra.mxu1 %v4728_v49  ;;  %v4791_v48 = vld [vmem:[%s5983_s1 + $0x6e0] ss:$16 sps:$4 sm:$0xff]   ;;  %v4794_v49 = vld [vmem:[%s5983_s1 + $0x6e8] ss:$16 sps:$4 sm:$0xff]  }
  0xb8   : > { %2426 = vmatprep.subr.bf16.mxu0 %v4733_v50  ;;  %2878 = vmatprep.subr.bf16.mxu1 %v4736_v51  ;;  %v3750_v50 = vcombine.high %v266_v43, %v270_v45  ;;  %v4799_v51 = vld [vmem:[%s5983_s1 + $0x704] ss:$16 sps:$4 sm:$0xff]  }
  0xb9   : > { %2389 = vmatprep.mubr.bf16.mxu0 %v3772_v52  ;;  %2841 = vmatprep.mubr.bf16.mxu1 %v3772_v52  ;;  %v4802_v52 = vld [vmem:[%s5983_s1 + $0x70c] ss:$16 sps:$4 sm:$0xff]  }
  0xbb   : > { %2427 = vmatpush1.bf16.msra.mxu0 %v4731_v53  ;;  %2879 = vmatpush1.bf16.msra.mxu1 %v4734_v54  ;;  %v3749_v53 = vcombine.low %v266_v43, %v270_v45  ;;  %v274_v54 = vld [vmem:[%s5063_s19 + $0x150] sm:$0xff]  ;;  %v4849_v43 = vld [vmem:[%s5985_s3 + $0x48] sm:$0xff]   ;;  %v251_v45 = vld [vmem:[%s5063_s19 + $0x98] sm:$0xff] }
  0xbc   : > { %2428 = vmatprep.subr.bf16.mxu0 %v4739_v55  ;;  %2880 = vmatprep.subr.bf16.mxu1 %v4742_v56  ;;  %v278_v55 = vld [vmem:[%s5063_s19 + $0x170] sm:$0xff] }
  0xbd   : > { %v4797_v56 = vld [vmem:[%s5983_s1 + $0x700] ss:$16 sps:$4 sm:$0xff]   ;;  %v3758_v60 = vcombine.high %v274_v54, %v278_v55 }
  0xbe   : > { %2390 = vmatmul.mubr.bf16.gmra.mrb[28].mxu0 %v3771_v59  ;;  %2842 = vmatmul.mubr.bf16.gmra.mrb[28].mxu1 %v3771_v59  ;;  %v4808_v59 = vld [vmem:[%s5983_s1 + $0x72c] ss:$16 sps:$4 sm:$0xff]  }
  0xbf   : > { %2429 = vmatpush1.bf16.msra.mxu0 %v4737_v57  ;;  %2881 = vmatpush1.bf16.msra.mxu1 %v4740_v58  ;;  %v4800_v57 = vld [vmem:[%s5983_s1 + $0x708] ss:$16 sps:$4 sm:$0xff]   ;;  %v4805_v58 = vld [vmem:[%s5983_s1 + $0x724] ss:$16 sps:$4 sm:$0xff]  }
  0xc0   : > { %2430 = vmatprep.subr.bf16.mxu0 %v4745_v62  ;;  %2882 = vmatprep.subr.bf16.mxu1 %v4748_v63  ;;  %v4806_v62 = vld [vmem:[%s5983_s1 + $0x728] ss:$16 sps:$4 sm:$0xff]   ;;  %v4811_v63 = vld [vmem:[%s5983_s1 + $0x744] ss:$16 sps:$4 sm:$0xff]  }
  0xc1   : > { %2432 = vmatprep.mubr.bf16.mxu0 %v3718_v0  ;;  %2884 = vmatprep.mubr.bf16.mxu1 %v3718_v0  ;;  %v4814_v0 = vld [vmem:[%s5983_s1 + $0x74c] ss:$16 sps:$4 sm:$0xff]  }
  0xc3   : > { %2431 = vmatpush1.bf16.msra.mxu0 %v4743_v1  ;;  %2883 = vmatpush1.bf16.msra.mxu1 %v4746_v2  ;;  %v3757_v1 = vcombine.low %v274_v54, %v278_v55  ;;  %v282_v2 = vld [vmem:[%s5063_s19 + $0x190] sm:$0xff]  ;;  %v4857_v55 = vld [vmem:[%s5985_s3 + $0x58] sm:$0xff]  }
  0xc4   : > { %2513 = vmatprep.subr.bf16.mxu0 %v4751_v3  ;;  %2965 = vmatprep.subr.bf16.mxu1 %v4754_v4  ;;  %v286_v3 = vld [vmem:[%s5063_s19 + $0x1b0] sm:$0xff] }
  0xc5   : > { %v4809_v4 = vld [vmem:[%s5983_s1 + $0x740] ss:$16 sps:$4 sm:$0xff]   ;;  %v3766_v8 = vcombine.high %v282_v2, %v286_v3 }
  0xc6   : > { %2433 = vmatmul.mubr.bf16.vlgmr.msra.gmra.mrb[0].mxu0 %v3717_v6  ;;  %2885 = vmatmul.mubr.bf16.vlgmr.msra.gmra.mrb[0].mxu1 %v3717_v6  ;;  %v4817_v6 = vld [vmem:[%s5983_s1 + $0x764] ss:$16 sps:$4 sm:$0xff]  }
  0xc7   : > { %2514 = vmatpush1.bf16.msra.mxu0 %v4749_v5  ;;  %2966 = vmatpush1.bf16.msra.mxu1 %v4752_v7  ;;  %v4812_v5 = vld [vmem:[%s5983_s1 + $0x748] ss:$16 sps:$4 sm:$0xff]   ;;  %v4820_v7 = vld [vmem:[%s5983_s1 + $0x76c] ss:$16 sps:$4 sm:$0xff]   ;;  %v4856_v54 = vld [vmem:[%s5985_s3 + $0x90] sm:$0xff]  }
  0xc8   : > { %2515 = vmatprep.subr.bf16.mxu0 %v4757_v10  ;;  %2967 = vmatprep.subr.bf16.mxu1 %v4760_v11  ;;  %v4818_v10 = vld [vmem:[%s5983_s1 + $0x768] ss:$16 sps:$4 sm:$0xff]   ;;  %v4823_v11 = vld [vmem:[%s5983_s1 + $0x784] ss:$16 sps:$4 sm:$0xff]  }
  0xc9   : > { %2442 = vmatprep.mubr.bf16.mxu0 %v3726_v13  ;;  %2894 = vmatprep.mubr.bf16.mxu1 %v3726_v13  ;;  %v3765_v13 = vcombine.low %v282_v2, %v286_v3  ;;  %v4864_v2 = vld [vmem:[%s5985_s3 + $0xa0] sm:$0xff]   ;;  %v4865_v3 = vld [vmem:[%s5985_s3 + $0x68] sm:$0xff]  }
  0xcb   : > { %2516 = vmatpush1.bf16.msra.mxu0 %v4755_v12  ;;  %2968 = vmatpush1.bf16.msra.mxu1 %v4758_v14  ;;  %v4826_v12 = vld [vmem:[%s5983_s1 + $0x78c] ss:$16 sps:$4 sm:$0xff]   ;;  %v290_v14 = vld [vmem:[%s5063_s19 + $0x1d0] sm:$0xff] }
  0xcc   : > { %2517 = vmatprep.subr.bf16.mxu0 %v4763_v15  ;;  %2969 = vmatprep.subr.bf16.mxu1 %v4766_v16  ;;  %v294_v15 = vld [vmem:[%s5063_s19 + $0x1f0] sm:$0xff] }
  0xcd   : > { %v4821_v16 = vld [vmem:[%s5983_s1 + $0x780] ss:$16 sps:$4 sm:$0xff]  }
  0xce   : > { %2443 = vmatmul.mubr.bf16.gmra.mrb[4].mxu0 %v3725_v20  ;;  %2895 = vmatmul.mubr.bf16.gmra.mrb[4].mxu1 %v3725_v20  ;;  %v3774_v20 = vcombine.high %v290_v14, %v294_v15 }
  0xcf   : > { %2518 = vmatpush1.bf16.msra.mxu0 %v4761_v17  ;;  %2970 = vmatpush1.bf16.msra.mxu1 %v4764_v18  ;;  %v4824_v17 = vld [vmem:[%s5983_s1 + $0x788] ss:$16 sps:$4 sm:$0xff]   ;;  %v4829_v18 = vld [vmem:[%s5983_s1 + $0x7a4] ss:$16 sps:$4 sm:$0xff]  }
  0xd0   : > { %2519 = vmatprep.subr.bf16.mxu0 %v4769_v22  ;;  %2971 = vmatprep.subr.bf16.mxu1 %v4772_v23  ;;  %v4830_v22 = vld [vmem:[%s5983_s1 + $0x7a8] ss:$16 sps:$4 sm:$0xff]   ;;  %v4835_v23 = vld [vmem:[%s5983_s1 + $0x7c4] ss:$16 sps:$4 sm:$0xff]  }
  0xd1   : > { %2452 = vmatprep.mubr.bf16.mxu0 %v3734_v25  ;;  %2904 = vmatprep.mubr.bf16.mxu1 %v3734_v25  ;;  %v3773_v25 = vcombine.low %v290_v14, %v294_v15  ;;  %v4872_v14 = vld [vmem:[%s5985_s3 + $0xb0] sm:$0xff]   ;;  %v275_v15 = vld [vmem:[%s5063_s19 + $0x158] sm:$0xff] }
  0xd3   : > { %2520 = vmatpush1.bf16.msra.mxu0 %v4767_v24  ;;  %2972 = vmatpush1.bf16.msra.mxu1 %v4770_v26  ;;  %v4838_v24 = vld [vmem:[%s5983_s1 + $0x7cc] ss:$16 sps:$4 sm:$0xff]  }
  0xd4   : > { %2521 = vmatprep.subr.bf16.mxu0 %v4775_v27  ;;  %2973 = vmatprep.subr.bf16.mxu1 %v4778_v28  ;;  %v235_v26 = vld [vmem:[%s5063_s19 + $0x18] sm:$0xff]  ;;  %v4833_v28 = vld [vmem:[%s5983_s1 + $0x7c0] ss:$16 sps:$4 sm:$0xff]  }
  0xd5   : > { %v239_v27 = vld [vmem:[%s5063_s19 + $0x38] sm:$0xff] }
  0xd6   : > { %2453 = vmatmul.mubr.bf16.gmra.mrb[8].mxu0 %v3733_v32  ;;  %2905 = vmatmul.mubr.bf16.gmra.mrb[8].mxu1 %v3733_v32  ;;  %v3720_v32 = vcombine.high %v235_v26, %v239_v27 }
  0xd7   : > { %2522 = vmatpush1.bf16.msra.mxu0 %v4773_v29  ;;  %2974 = vmatpush1.bf16.msra.mxu1 %v4776_v30  ;;  %v4836_v29 = vld [vmem:[%s5983_s1 + $0x7c8] ss:$16 sps:$4 sm:$0xff]   ;;  %v4841_v30 = vld [vmem:[%s5983_s1 + $0x7e4] ss:$16 sps:$4 sm:$0xff]  }
  0xd8   : > { %2523 = vmatprep.subr.bf16.mxu0 %v4781_v34  ;;  %2975 = vmatprep.subr.bf16.mxu1 %v4784_v35  ;;  %v4842_v34 = vld [vmem:[%s5983_s1 + $0x7e8] ss:$16 sps:$4 sm:$0xff]  }
  0xd9   : > { %2462 = vmatprep.mubr.bf16.mxu0 %v3742_v37  ;;  %2914 = vmatprep.mubr.bf16.mxu1 %v3742_v37  ;;  %v243_v35 = vld [vmem:[%s5063_s19 + $0x58] sm:$0xff]  ;;  %v4845_v37 = vld [vmem:[%s5985_s3 + $0x40] sm:$0xff]  }
  0xdb   : > { %2524 = vmatpush1.bf16.msra.mxu0 %v4779_v36  ;;  %2976 = vmatpush1.bf16.msra.mxu1 %v4782_v38  ;;  %v247_v36 = vld [vmem:[%s5063_s19 + $0x78] sm:$0xff]  ;;  %v4847_v38 = vld [vmem:[%s5985_s3 + $0xc0] sm:$0xff]  }
  0xdc   : > { %2525 = vmatprep.subr.bf16.mxu0 %v4787_v39  ;;  %2977 = vmatprep.subr.bf16.mxu1 %v4790_v40  ;;  %v3719_v39 = vcombine.low %v235_v26, %v239_v27  ;;  %v3728_v40 = vcombine.high %v243_v35, %v247_v36 }
  0xde   : > { %2463 = vmatmul.mubr.bf16.gmra.mrb[12].mxu0 %v3741_v44  ;;  %2915 = vmatmul.mubr.bf16.gmra.mrb[12].mxu1 %v3741_v44  ;;  %v4851_v44 = vld [vmem:[%s5985_s3 + $0xc8] sm:$0xff]  }
  0xdf   : > { %2526 = vmatpush1.bf16.msra.mxu0 %v4785_v41  ;;  %2978 = vmatpush1.bf16.msra.mxu1 %v4788_v42  ;;  %v4846_v41 = vld [vmem:[%s5985_s3] sm:$0xff]  }
  0xe0   : > { %2527 = vmatprep.subr.bf16.mxu0 %v4793_v46  ;;  %2979 = vmatprep.subr.bf16.mxu1 %v4796_v47  ;;  %v4848_v42 = vld [vmem:[%s5985_s3 + $0x80] sm:$0xff]   ;;  %v255_v46 = vld [vmem:[%s5063_s19 + $0xb8] sm:$0xff]  ;;  %v4850_v47 = vld [vmem:[%s5985_s3 + $0x8] sm:$0xff]  }
  0xe1   : > { %2472 = vmatprep.mubr.bf16.mxu0 %v3750_v50  ;;  %2924 = vmatprep.mubr.bf16.mxu1 %v3750_v50  ;;  %v4855_v50 = vld [vmem:[%s5985_s3 + $0xd0] sm:$0xff]  }
  0xe3   : > { %2528 = vmatpush1.bf16.msra.mxu0 %v4791_v48  ;;  %2980 = vmatpush1.bf16.msra.mxu1 %v4794_v49  ;;  %v4852_v48 = vld [vmem:[%s5985_s3 + $0x88] sm:$0xff]   ;;  %v4853_v49 = vld [vmem:[%s5985_s3 + $0x50] sm:$0xff]  }
  0xe4   : > { %2529 = vmatprep.subr.bf16.mxu0 %v4799_v51  ;;  %2981 = vmatprep.subr.bf16.mxu1 %v4802_v52  ;;  %v3727_v51 = vcombine.low %v243_v35, %v247_v36  ;;  %v3736_v52 = vcombine.high %v251_v45, %v255_v46  ;;  %v552_v36 = vld [vmem:[%s5984_s2] sm:$0xf] }
  0xe6   : > { %2473 = vmatmul.mubr.bf16.gmra.mrb[16].mxu0 %v3749_v53  ;;  %2925 = vmatmul.mubr.bf16.gmra.mrb[16].mxu1 %v3749_v53  ;;  %v4854_v53 = vld [vmem:[%s5985_s3 + $0x10] sm:$0xff]  }
  0xe7   : > { %2530 = vmatpush1.bf16.msra.mxu0 %v4797_v56  ;;  %2982 = vmatpush1.bf16.msra.mxu1 %v4800_v57  ;;  %v4859_v56 = vld [vmem:[%s5985_s3 + $0xd8] sm:$0xff]  }
  0xe8   : > { %2531 = vmatprep.subr.bf16.mxu0 %v4805_v58  ;;  %2983 = vmatprep.subr.bf16.mxu1 %v4808_v59  ;;  %v259_v57 = vld [vmem:[%s5063_s19 + $0xd8] sm:$0xff] }
  0xe9   : > { %2482 = vmatprep.mubr.bf16.mxu0 %v3758_v60  ;;  %2934 = vmatprep.mubr.bf16.mxu1 %v3758_v60  ;;  %v263_v58 = vld [vmem:[%s5063_s19 + $0xf8] sm:$0xff] }
  0xea   : > { %v4858_v59 = vld [vmem:[%s5985_s3 + $0x18] sm:$0xff]  }
  0xeb   : > { %2532 = vmatpush1.bf16.msra.mxu0 %v4803_v61  ;;  %2984 = vmatpush1.bf16.msra.mxu1 %v4806_v62  ;;  %v4860_v60 = vld [vmem:[%s5985_s3 + $0x98] sm:$0xff]   ;;  %v4861_v61 = vld [vmem:[%s5985_s3 + $0x60] sm:$0xff]  }
  0xec   : > { %2533 = vmatprep.subr.bf16.mxu0 %v4811_v63  ;;  %2985 = vmatprep.subr.bf16.mxu1 %v4814_v0  ;;  %v4863_v62 = vld [vmem:[%s5985_s3 + $0xe0] sm:$0xff]   ;;  %v3735_v63 = vcombine.low %v251_v45, %v255_v46  ;;  %v3744_v0 = vcombine.high %v259_v57, %v263_v58 }
  0xee   : > { %2483 = vmatmul.mubr.bf16.gmra.mrb[20].mxu0 %v3757_v1  ;;  %2935 = vmatmul.mubr.bf16.gmra.mrb[20].mxu1 %v3757_v1  ;;  %v4862_v1 = vld [vmem:[%s5985_s3 + $0x20] sm:$0xff]  }
  0xef   : > { %2534 = vmatpush1.bf16.msra.mxu0 %v4809_v4  ;;  %2986 = vmatpush1.bf16.msra.mxu1 %v4812_v5  ;;  %v4867_v4 = vld [vmem:[%s5985_s3 + $0xe8] sm:$0xff]   ;;  %v267_v5 = vld [vmem:[%s5063_s19 + $0x118] sm:$0xff] }
  0xf0   : > { %2535 = vmatprep.subr.bf16.mxu0 %v4817_v6  ;;  %2987 = vmatprep.subr.bf16.mxu1 %v4820_v7  ;;  %v271_v6 = vld [vmem:[%s5063_s19 + $0x138] sm:$0xff]  ;;  %v4866_v7 = vld [vmem:[%s5985_s3 + $0x28] sm:$0xff]  }
  0xf1   : > { %2492 = vmatprep.mubr.bf16.mxu0 %v3766_v8  ;;  %2944 = vmatprep.mubr.bf16.mxu1 %v3766_v8  ;;  %v4868_v8 = vld [vmem:[%s5985_s3 + $0xa8] sm:$0xff]  }
  0xf3   : > { %2536 = vmatpush1.bf16.msra.mxu0 %v4815_v9  ;;  %2988 = vmatpush1.bf16.msra.mxu1 %v4818_v10  ;;  %v4869_v9 = vld [vmem:[%s5985_s3 + $0x70] sm:$0xff]  }
  0xf4   : > { %2537 = vmatprep.subr.bf16.mxu0 %v4823_v11  ;;  %2989 = vmatprep.subr.bf16.mxu1 %v4826_v12  ;;  %v4871_v10 = vld [vmem:[%s5985_s3 + $0xf0] sm:$0xff]   ;;  %v3743_v11 = vcombine.low %v259_v57, %v263_v58  ;;  %v3752_v12 = vcombine.high %v267_v5, %v271_v6 }
  0xf6   : > { %2493 = vmatmul.mubr.bf16.gmra.mrb[24].mxu0 %v3765_v13  ;;  %2945 = vmatmul.mubr.bf16.gmra.mrb[24].mxu1 %v3765_v13  ;;  %v4870_v13 = vld [vmem:[%s5985_s3 + $0x30] sm:$0xff]  }
  0xf7   : > { %2538 = vmatpush1.bf16.msra.mxu0 %v4821_v16  ;;  %2990 = vmatpush1.bf16.msra.mxu1 %v4824_v17  ;;  %v279_v16 = vld [vmem:[%s5063_s19 + $0x178] sm:$0xff]  ;;  %v3751_v17 = vcombine.low %v267_v5, %v271_v6 }
  0xf8   : > { %2539 = vmatprep.subr.bf16.mxu0 %v4829_v18  ;;  %2991 = vmatprep.subr.bf16.mxu1 %v4832_v19  ;;  %v3760_v18 = vcombine.high %v275_v15, %v279_v16  ;;  %v283_v19 = vld [vmem:[%s5063_s19 + $0x198] sm:$0xff] }
  0xf9   : > { %2502 = vmatprep.mubr.bf16.mxu0 %v3774_v20  ;;  %2954 = vmatprep.mubr.bf16.mxu1 %v3774_v20  ;;  %v287_v20 = vld [vmem:[%s5063_s19 + $0x1b8] sm:$0xff] }
  0xfb   : > { %2540 = vmatpush1.bf16.msra.mxu0 %v4827_v21  ;;  %2992 = vmatpush1.bf16.msra.mxu1 %v4830_v22  ;;  %v3759_v21 = vcombine.low %v275_v15, %v279_v16  ;;  %v3768_v22 = vcombine.high %v283_v19, %v287_v20 }
  0xfc   : > { %2541 = vmatprep.subr.bf16.mxu0 %v4835_v23  ;;  %2993 = vmatprep.subr.bf16.mxu1 %v4838_v24  ;;  %v291_v23 = vld [vmem:[%s5063_s19 + $0x1d8] sm:$0xff] }
  0xfd   : > { %v295_v24 = vld [vmem:[%s5063_s19 + $0x1f8] sm:$0xff] }
  0xfe   : > { %2503 = vmatmul.mubr.bf16.gmra.mrb[28].mxu0 %v3773_v25  ;;  %2955 = vmatmul.mubr.bf16.gmra.mrb[28].mxu1 %v3773_v25  ;;  %v3767_v25 = vcombine.low %v283_v19, %v287_v20  ;;  %v3776_v26 = vcombine.high %v291_v23, %v295_v24  ;;  %v3775_v27 = vcombine.low %v291_v23, %v295_v24 }
  0xff   : > { %2542 = vmatpush1.bf16.msra.mxu0 %v4833_v28  ;;  %2994 = vmatpush1.bf16.msra.mxu1 %v4836_v29  ;;  %v4873_v28 = vld [vmem:[%s5985_s3 + $0x78] sm:$0xff]  }
 0x100   : > { %2543 = vmatprep.subr.bf16.mxu0 %v4841_v30  ;;  %2995 = vmatprep.subr.bf16.mxu1 %v4844_v31  ;;  %v4875_v29 = vld [vmem:[%s5985_s3 + $0xf8] sm:$0xff]  }
 0x101   : > { %2545 = vmatprep.mubr.bf16.mxu0 %v3720_v32  ;;  %2997 = vmatprep.mubr.bf16.mxu1 %v3720_v32  ;;  %v4874_v30 = vld [vmem:[%s5985_s3 + $0x38] sm:$0xff]   ;;  %v554_v32 = vlaneseq }
 0x102   : > { %v4876_v31 = vld [vmem:[%s5985_s3 + $0xb8] sm:$0xff]  }
 0x103   : > { %2544 = vmatpush1.bf16.msra.mxu0 %v4839_v33  ;;  %2996 = vmatpush1.bf16.msra.mxu1 %v4842_v34  ;;  %v555_v33 = vshrl.u32 %v554_v32, 7 }
 0x104   : > { %4069 = vmatprep.subr.bf16.mxu0 %v4845_v37  ;;  %4133 = vmatprep.subr.bf16.mxu1 %v4847_v38 }
 0x105   : > { %v556_v34 = vsub.s32 0, %v555_v33  ;;  %v564_v35 = vsub.s32 2, %v555_v33  ;;  %v560_v37 = vsub.s32 1, %v555_v33  ;;  %v568_v38 = vsub.s32 3, %v555_v33 }
 0x106   : > { %2546 = vmatmul.mubr.bf16.vlgmr.msra.gmra.mrb[0].mxu0 %v3719_v39  ;;  %2998 = vmatmul.mubr.bf16.vlgmr.msra.gmra.mrb[0].mxu1 %v3719_v39 }
 0x107   : > { %2555 = vmatprep.mubr.bf16.mxu0 %v3728_v40  ;;  %3007 = vmatprep.mubr.bf16.mxu1 %v3728_v40  ;;  %v5864_v39 = vrot.slane %v552_v36, %v556_v34  ;;  %v5866_v40 = vrot.slane %v552_v36, %v564_v35 }
 0x108   : > { %4070 = vmatpush3.bf16.msra.mxu0 %v4846_v41  ;;  %4134 = vmatpush3.bf16.msra.mxu1 %v4848_v42  ;;  %v5868_v41 = vrot.slane %v552_v36, %v560_v37  ;;  %v5870_v42 = vrot.slane %v552_v36, %v568_v38 }
 0x109   : > { %4071 = vmatprep.subr.bf16.mxu0 %v4849_v43  ;;  %4135 = vmatprep.subr.bf16.mxu1 %v4851_v44 }
 0x10c   : > { %4072 = vmatpush3.bf16.msra.mxu0 %v4850_v47  ;;  %4136 = vmatpush3.bf16.msra.mxu1 %v4852_v48 }
 0x10d   : > { %4073 = vmatprep.subr.bf16.mxu0 %v4853_v49  ;;  %4137 = vmatprep.subr.bf16.mxu1 %v4855_v50 }
 0x10e   : > { %2556 = vmatmul.mubr.bf16.gmra.mrb[4].mxu0 %v3727_v51  ;;  %3008 = vmatmul.mubr.bf16.gmra.mrb[4].mxu1 %v3727_v51 }
 0x10f   : > { %2565 = vmatprep.mubr.bf16.mxu0 %v3736_v52  ;;  %3017 = vmatprep.mubr.bf16.mxu1 %v3736_v52 }
 0x110   : > { %4074 = vmatpush3.bf16.msra.mxu0 %v4854_v53  ;;  %4138 = vmatpush3.bf16.msra.mxu1 %v4856_v54 }
 0x111   : > { %4075 = vmatprep.subr.bf16.mxu0 %v4857_v55  ;;  %4139 = vmatprep.subr.bf16.mxu1 %v4859_v56 }
 0x114   : > { %4076 = vmatpush3.bf16.msra.mxu0 %v4858_v59  ;;  %4140 = vmatpush3.bf16.msra.mxu1 %v4860_v60 }
 0x115   : > { %4077 = vmatprep.subr.bf16.mxu0 %v4861_v61  ;;  %4141 = vmatprep.subr.bf16.mxu1 %v4863_v62 }
 0x116   : > { %2566 = vmatmul.mubr.bf16.gmra.mrb[8].mxu0 %v3735_v63  ;;  %3018 = vmatmul.mubr.bf16.gmra.mrb[8].mxu1 %v3735_v63 }
 0x117   : > { %2575 = vmatprep.mubr.bf16.mxu0 %v3744_v0  ;;  %3027 = vmatprep.mubr.bf16.mxu1 %v3744_v0 }
 0x118   : > { %4078 = vmatpush3.bf16.msra.mxu0 %v4862_v1  ;;  %4142 = vmatpush3.bf16.msra.mxu1 %v4864_v2 }
 0x119   : > { %4079 = vmatprep.subr.bf16.mxu0 %v4865_v3  ;;  %4143 = vmatprep.subr.bf16.mxu1 %v4867_v4 }
 0x11c   : > { %4080 = vmatpush3.bf16.msra.mxu0 %v4866_v7  ;;  %4144 = vmatpush3.bf16.msra.mxu1 %v4868_v8 }
 0x11d   : > { %4081 = vmatprep.subr.bf16.mxu0 %v4869_v9  ;;  %4145 = vmatprep.subr.bf16.mxu1 %v4871_v10 }
 0x11e   : > { %2576 = vmatmul.mubr.bf16.gmra.mrb[12].mxu0 %v3743_v11  ;;  %3028 = vmatmul.mubr.bf16.gmra.mrb[12].mxu1 %v3743_v11 }
 0x11f   : > { %2585 = vmatprep.mubr.bf16.mxu0 %v3752_v12  ;;  %3037 = vmatprep.mubr.bf16.mxu1 %v3752_v12 }
 0x120   : > { %4082 = vmatpush3.bf16.msra.mxu0 %v4870_v13  ;;  %4146 = vmatpush3.bf16.msra.mxu1 %v4872_v14 }
 0x121   : > { %4083 = vmatprep.subr.bf16.mxu0 %v4873_v28  ;;  %4147 = vmatprep.subr.bf16.mxu1 %v4875_v29 }
 0x124   : > { %4084 = vmatpush3.bf16.msra.mxu0 %v4874_v30  ;;  %4148 = vmatpush3.bf16.msra.mxu1 %v4876_v31 }
 0x126   : > { %2586 = vmatmul.mubr.bf16.gmra.mrb[16].mxu0 %v3751_v17  ;;  %3038 = vmatmul.mubr.bf16.gmra.mrb[16].mxu1 %v3751_v17 }
 0x127   : > { %2595 = vmatprep.mubr.bf16.mxu0 %v3760_v18  ;;  %3047 = vmatprep.mubr.bf16.mxu1 %v3760_v18 }
 0x12e   : > { %2596 = vmatmul.mubr.bf16.gmra.mrb[20].mxu0 %v3759_v21  ;;  %3048 = vmatmul.mubr.bf16.gmra.mrb[20].mxu1 %v3759_v21 }
 0x12f   : > { %2605 = vmatprep.mubr.bf16.mxu0 %v3768_v22  ;;  %3057 = vmatprep.mubr.bf16.mxu1 %v3768_v22 }
 0x136   : > { %2606 = vmatmul.mubr.bf16.gmra.mrb[24].mxu0 %v3767_v25  ;;  %3058 = vmatmul.mubr.bf16.gmra.mrb[24].mxu1 %v3767_v25 }
 0x137   : > { %2615 = vmatprep.mubr.bf16.mxu0 %v3776_v26  ;;  %3067 = vmatprep.mubr.bf16.mxu1 %v3776_v26 }
 0x13e   : > { %2616 = vmatmul.mubr.bf16.gmra.mrb[28].mxu0 %v3775_v27  ;;  %3068 = vmatmul.mubr.bf16.gmra.mrb[28].mxu1 %v3775_v27 }
 0x1d9   : > { %v2547_v43 = vpop.f32.mrb[0].mxu0  ;;  %v2999_v44 = vpop.f32.mrb[0].mxu1 }
 0x1da   : > { %v4197_v45 = vadd.f32 %v2547_v43, %v5864_v39  ;;  %v4229_v46 = vadd.f32 %v2999_v44, %v5866_v40  ;;  %v2549_v47 = vpop.f32.mrb[1].mxu0  ;;  %v3001_v48 = vpop.f32.mrb[1].mxu1 }
 0x1db   : > { %v4198_v49 = vadd.f32 %v2549_v47, %v5868_v41  ;;  %v4230_v50 = vadd.f32 %v3001_v48, %v5870_v42  ;;  %v2551_v51 = vpop.f32.mrb[2].mxu0  ;;  %v3003_v52 = vpop.f32.mrb[2].mxu1 }
 0x1dc   : > { %v4199_v53 = vadd.f32 %v2551_v51, %v5864_v39  ;;  %v4231_v54 = vadd.f32 %v3003_v52, %v5866_v40  ;;  %v2553_v55 = vpop.f32.mrb[3].mxu0  ;;  %v3005_v56 = vpop.f32.mrb[3].mxu1  ;;  %v3078_v59 = vmax.f32 %v4197_v45, 0.0  ;;  %v3080_v60 = vmax.f32 %v4229_v46, 0.0 }
 0x1dd   : > { %v4200_v57 = vadd.f32 %v2553_v55, %v5868_v41  ;;  %v4232_v58 = vadd.f32 %v3005_v56, %v5870_v42  ;;  %v3079_v63 = vmax.f32 %v4198_v49, 0.0  ;;  %v3081_v0 = vmax.f32 %v4230_v50, 0.0 }
 0x1de   : > { %v3082_v61 = vmax.f32 %v4199_v53, 0.0  ;;  %v3084_v62 = vmax.f32 %v4231_v54, 0.0 }
 0x1df   : > { %v3083_v1 = vmax.f32 %v4200_v57, 0.0  ;;  %v3085_v2 = vmax.f32 %v4232_v58, 0.0 }
 0x1e0   : > { %v3142_v3 = vpack.c.bf16 %v3082_v61, %v3078_v59  ;;  %v3144_v4 = vpack.c.bf16 %v3084_v62, %v3080_v60 }
 0x1e1   : > { %v3143_v5 = vpack.c.bf16 %v3083_v1, %v3079_v63  ;;  %v3145_v6 = vpack.c.bf16 %v3085_v2, %v3081_v0  ;;  %v2557_v7 = vpop.f32.mrb[4].mxu0  ;;  %v3009_v8 = vpop.f32.mrb[4].mxu1 }
 0x1e2   : > { %v4201_v9 = vadd.f32 %v2557_v7, %v5864_v39  ;;  %v4233_v10 = vadd.f32 %v3009_v8, %v5866_v40  ;;  %v2559_v11 = vpop.f32.mrb[5].mxu0  ;;  %v3011_v12 = vpop.f32.mrb[5].mxu1 }
 0x1e3   : > { %v4202_v13 = vadd.f32 %v2559_v11, %v5868_v41  ;;  %v4234_v14 = vadd.f32 %v3011_v12, %v5870_v42  ;;  %v2561_v15 = vpop.f32.mrb[6].mxu0  ;;  %v3013_v16 = vpop.f32.mrb[6].mxu1  ;;  %3469 = vmatprep.mubr.bf16.mxu0 %v3143_v5  ;;  %3566 = vmatprep.mubr.bf16.mxu1 %v3145_v6 }
 0x1e4   : > { %v4203_v17 = vadd.f32 %v2561_v15, %v5864_v39  ;;  %v4235_v18 = vadd.f32 %v3013_v16, %v5866_v40  ;;  %v2563_v19 = vpop.f32.mrb[7].mxu0  ;;  %v3015_v20 = vpop.f32.mrb[7].mxu1  ;;  %3470 = vmatmul.mubr.bf16.vlgmr.msra.gmra.mrb[32].mxu0 %v3142_v3  ;;  %3567 = vmatmul.mubr.bf16.vlgmr.msra.gmra.mrb[32].mxu1 %v3144_v4  ;;  %v3086_v23 = vmax.f32 %v4201_v9, 0.0  ;;  %v3088_v24 = vmax.f32 %v4233_v10, 0.0 }
 0x1e5   : > { %v4204_v21 = vadd.f32 %v2563_v19, %v5868_v41  ;;  %v4236_v22 = vadd.f32 %v3015_v20, %v5870_v42  ;;  %v3087_v27 = vmax.f32 %v4202_v13, 0.0  ;;  %v3089_v28 = vmax.f32 %v4234_v14, 0.0 }
 0x1e6   : > { %v3090_v25 = vmax.f32 %v4203_v17, 0.0  ;;  %v3092_v26 = vmax.f32 %v4235_v18, 0.0 }
 0x1e7   : > { %v3091_v29 = vmax.f32 %v4204_v21, 0.0  ;;  %v3093_v30 = vmax.f32 %v4236_v22, 0.0 }
 0x1e8   : > { %v3146_v31 = vpack.c.bf16 %v3090_v25, %v3086_v23  ;;  %v3148_v32 = vpack.c.bf16 %v3092_v26, %v3088_v24 }
 0x1e9   : > { %v3147_v33 = vpack.c.bf16 %v3091_v29, %v3087_v27  ;;  %v3149_v34 = vpack.c.bf16 %v3093_v30, %v3089_v28  ;;  %v2567_v35 = vpop.f32.mrb[8].mxu0  ;;  %v3019_v36 = vpop.f32.mrb[8].mxu1 }
 0x1ea   : > { %v4205_v37 = vadd.f32 %v2567_v35, %v5864_v39  ;;  %v4237_v38 = vadd.f32 %v3019_v36, %v5866_v40  ;;  %v2569_v43 = vpop.f32.mrb[9].mxu0  ;;  %v3021_v44 = vpop.f32.mrb[9].mxu1 }
 0x1eb   : > { %v4206_v45 = vadd.f32 %v2569_v43, %v5868_v41  ;;  %v4238_v46 = vadd.f32 %v3021_v44, %v5870_v42  ;;  %v2571_v47 = vpop.f32.mrb[10].mxu0  ;;  %v3023_v48 = vpop.f32.mrb[10].mxu1  ;;  %3477 = vmatprep.mubr.bf16.mxu0 %v3147_v33  ;;  %3574 = vmatprep.mubr.bf16.mxu1 %v3149_v34 }
 0x1ec   : > { %v4207_v49 = vadd.f32 %v2571_v47, %v5864_v39  ;;  %v4239_v50 = vadd.f32 %v3023_v48, %v5866_v40  ;;  %v2573_v51 = vpop.f32.mrb[11].mxu0  ;;  %v3025_v52 = vpop.f32.mrb[11].mxu1  ;;  %3478 = vmatmul.mubr.bf16.gmra.mrb[36].mxu0 %v3146_v31  ;;  %3575 = vmatmul.mubr.bf16.gmra.mrb[36].mxu1 %v3148_v32  ;;  %v3094_v55 = vmax.f32 %v4205_v37, 0.0  ;;  %v3096_v56 = vmax.f32 %v4237_v38, 0.0 }
 0x1ed   : > { %v4208_v53 = vadd.f32 %v2573_v51, %v5868_v41  ;;  %v4240_v54 = vadd.f32 %v3025_v52, %v5870_v42  ;;  %v3095_v59 = vmax.f32 %v4206_v45, 0.0  ;;  %v3097_v60 = vmax.f32 %v4238_v46, 0.0 }
 0x1ee   : > { %v3098_v57 = vmax.f32 %v4207_v49, 0.0  ;;  %v3100_v58 = vmax.f32 %v4239_v50, 0.0 }
 0x1ef   : > { %v3099_v61 = vmax.f32 %v4208_v53, 0.0  ;;  %v3101_v62 = vmax.f32 %v4240_v54, 0.0 }
 0x1f0   : > { %v3150_v63 = vpack.c.bf16 %v3098_v57, %v3094_v55  ;;  %v3152_v0 = vpack.c.bf16 %v3100_v58, %v3096_v56 }
 0x1f1   : > { %v3151_v1 = vpack.c.bf16 %v3099_v61, %v3095_v59  ;;  %v3153_v2 = vpack.c.bf16 %v3101_v62, %v3097_v60  ;;  %v2577_v3 = vpop.f32.mrb[12].mxu0  ;;  %v3029_v4 = vpop.f32.mrb[12].mxu1 }
 0x1f2   : > { %v4209_v5 = vadd.f32 %v2577_v3, %v5864_v39  ;;  %v4241_v6 = vadd.f32 %v3029_v4, %v5866_v40  ;;  %v2579_v7 = vpop.f32.mrb[13].mxu0  ;;  %v3031_v8 = vpop.f32.mrb[13].mxu1 }
 0x1f3   : > { %v4210_v9 = vadd.f32 %v2579_v7, %v5868_v41  ;;  %v4242_v10 = vadd.f32 %v3031_v8, %v5870_v42  ;;  %v2581_v11 = vpop.f32.mrb[14].mxu0  ;;  %v3033_v12 = vpop.f32.mrb[14].mxu1  ;;  %3485 = vmatprep.mubr.bf16.mxu0 %v3151_v1  ;;  %3582 = vmatprep.mubr.bf16.mxu1 %v3153_v2 }
 0x1f4   : > { %v4211_v13 = vadd.f32 %v2581_v11, %v5864_v39  ;;  %v4243_v14 = vadd.f32 %v3033_v12, %v5866_v40  ;;  %v2583_v15 = vpop.f32.mrb[15].mxu0  ;;  %v3035_v16 = vpop.f32.mrb[15].mxu1  ;;  %3486 = vmatmul.mubr.bf16.gmra.mrb[40].mxu0 %v3150_v63  ;;  %3583 = vmatmul.mubr.bf16.gmra.mrb[40].mxu1 %v3152_v0  ;;  %v3102_v19 = vmax.f32 %v4209_v5, 0.0  ;;  %v3104_v20 = vmax.f32 %v4241_v6, 0.0 }
 0x1f5   : > { %v4212_v17 = vadd.f32 %v2583_v15, %v5868_v41  ;;  %v4244_v18 = vadd.f32 %v3035_v16, %v5870_v42  ;;  %v3103_v23 = vmax.f32 %v4210_v9, 0.0  ;;  %v3105_v24 = vmax.f32 %v4242_v10, 0.0 }
 0x1f6   : > { %v3106_v21 = vmax.f32 %v4211_v13, 0.0  ;;  %v3108_v22 = vmax.f32 %v4243_v14, 0.0 }
 0x1f7   : > { %v3107_v25 = vmax.f32 %v4212_v17, 0.0  ;;  %v3109_v26 = vmax.f32 %v4244_v18, 0.0 }
 0x1f8   : > { %v3154_v27 = vpack.c.bf16 %v3106_v21, %v3102_v19  ;;  %v3156_v28 = vpack.c.bf16 %v3108_v22, %v3104_v20 }
 0x1f9   : > { %v3155_v29 = vpack.c.bf16 %v3107_v25, %v3103_v23  ;;  %v3157_v30 = vpack.c.bf16 %v3109_v26, %v3105_v24  ;;  %v2587_v31 = vpop.f32.mrb[16].mxu0  ;;  %v3039_v32 = vpop.f32.mrb[16].mxu1 }
 0x1fa   : > { %v4213_v33 = vadd.f32 %v2587_v31, %v5864_v39  ;;  %v4245_v34 = vadd.f32 %v3039_v32, %v5866_v40  ;;  %v2589_v35 = vpop.f32.mrb[17].mxu0  ;;  %v3041_v36 = vpop.f32.mrb[17].mxu1 }
 0x1fb   : > { %v4214_v37 = vadd.f32 %v2589_v35, %v5868_v41  ;;  %v4246_v38 = vadd.f32 %v3041_v36, %v5870_v42  ;;  %v2591_v43 = vpop.f32.mrb[18].mxu0  ;;  %v3043_v44 = vpop.f32.mrb[18].mxu1  ;;  %3493 = vmatprep.mubr.bf16.mxu0 %v3155_v29  ;;  %3590 = vmatprep.mubr.bf16.mxu1 %v3157_v30 }
 0x1fc   : > { %v4215_v45 = vadd.f32 %v2591_v43, %v5864_v39  ;;  %v4247_v46 = vadd.f32 %v3043_v44, %v5866_v40  ;;  %v2593_v47 = vpop.f32.mrb[19].mxu0  ;;  %v3045_v48 = vpop.f32.mrb[19].mxu1  ;;  %3494 = vmatmul.mubr.bf16.gmra.mrb[44].mxu0 %v3154_v27  ;;  %3591 = vmatmul.mubr.bf16.gmra.mrb[44].mxu1 %v3156_v28  ;;  %v3110_v51 = vmax.f32 %v4213_v33, 0.0  ;;  %v3112_v52 = vmax.f32 %v4245_v34, 0.0 }
 0x1fd   : > { %v4216_v49 = vadd.f32 %v2593_v47, %v5868_v41  ;;  %v4248_v50 = vadd.f32 %v3045_v48, %v5870_v42  ;;  %v3111_v55 = vmax.f32 %v4214_v37, 0.0  ;;  %v3113_v56 = vmax.f32 %v4246_v38, 0.0 }
 0x1fe   : > { %v3114_v53 = vmax.f32 %v4215_v45, 0.0  ;;  %v3116_v54 = vmax.f32 %v4247_v46, 0.0 }
 0x1ff   : > { %v3115_v57 = vmax.f32 %v4216_v49, 0.0  ;;  %v3117_v58 = vmax.f32 %v4248_v50, 0.0 }
 0x200   : > { %v3158_v59 = vpack.c.bf16 %v3114_v53, %v3110_v51  ;;  %v3160_v60 = vpack.c.bf16 %v3116_v54, %v3112_v52 }
 0x201   : > { %v3159_v61 = vpack.c.bf16 %v3115_v57, %v3111_v55  ;;  %v3161_v62 = vpack.c.bf16 %v3117_v58, %v3113_v56  ;;  %v2597_v63 = vpop.f32.mrb[20].mxu0  ;;  %v3049_v0 = vpop.f32.mrb[20].mxu1 }
 0x202   : > { %v4217_v1 = vadd.f32 %v2597_v63, %v5864_v39  ;;  %v4249_v2 = vadd.f32 %v3049_v0, %v5866_v40  ;;  %v2599_v3 = vpop.f32.mrb[21].mxu0  ;;  %v3051_v4 = vpop.f32.mrb[21].mxu1 }
 0x203   : > { %v4218_v5 = vadd.f32 %v2599_v3, %v5868_v41  ;;  %v4250_v6 = vadd.f32 %v3051_v4, %v5870_v42  ;;  %v2601_v7 = vpop.f32.mrb[22].mxu0  ;;  %v3053_v8 = vpop.f32.mrb[22].mxu1  ;;  %3501 = vmatprep.mubr.bf16.mxu0 %v3159_v61  ;;  %3598 = vmatprep.mubr.bf16.mxu1 %v3161_v62 }
 0x204   : > { %v4219_v9 = vadd.f32 %v2601_v7, %v5864_v39  ;;  %v4251_v10 = vadd.f32 %v3053_v8, %v5866_v40  ;;  %v2603_v11 = vpop.f32.mrb[23].mxu0  ;;  %v3055_v12 = vpop.f32.mrb[23].mxu1  ;;  %3502 = vmatmul.mubr.bf16.gmra.mrb[48].mxu0 %v3158_v59  ;;  %3599 = vmatmul.mubr.bf16.gmra.mrb[48].mxu1 %v3160_v60  ;;  %v3118_v15 = vmax.f32 %v4217_v1, 0.0  ;;  %v3120_v16 = vmax.f32 %v4249_v2, 0.0 }
 0x205   : > { %v4220_v13 = vadd.f32 %v2603_v11, %v5868_v41  ;;  %v4252_v14 = vadd.f32 %v3055_v12, %v5870_v42  ;;  %v3119_v19 = vmax.f32 %v4218_v5, 0.0  ;;  %v3121_v20 = vmax.f32 %v4250_v6, 0.0 }
 0x206   : > { %v3122_v17 = vmax.f32 %v4219_v9, 0.0  ;;  %v3124_v18 = vmax.f32 %v4251_v10, 0.0 }
 0x207   : > { %v3123_v21 = vmax.f32 %v4220_v13, 0.0  ;;  %v3125_v22 = vmax.f32 %v4252_v14, 0.0 }
 0x208   : > { %v3162_v23 = vpack.c.bf16 %v3122_v17, %v3118_v15  ;;  %v3164_v24 = vpack.c.bf16 %v3124_v18, %v3120_v16 }
 0x209   : > { %v3163_v25 = vpack.c.bf16 %v3123_v21, %v3119_v19  ;;  %v3165_v26 = vpack.c.bf16 %v3125_v22, %v3121_v20  ;;  %v2607_v27 = vpop.f32.mrb[24].mxu0  ;;  %v3059_v28 = vpop.f32.mrb[24].mxu1 }
 0x20a   : > { %v4221_v29 = vadd.f32 %v2607_v27, %v5864_v39  ;;  %v4253_v30 = vadd.f32 %v3059_v28, %v5866_v40  ;;  %v2609_v31 = vpop.f32.mrb[25].mxu0  ;;  %v3061_v32 = vpop.f32.mrb[25].mxu1 }
 0x20b   : > { %v4222_v33 = vadd.f32 %v2609_v31, %v5868_v41  ;;  %v4254_v34 = vadd.f32 %v3061_v32, %v5870_v42  ;;  %v2611_v35 = vpop.f32.mrb[26].mxu0  ;;  %v3063_v36 = vpop.f32.mrb[26].mxu1  ;;  %3509 = vmatprep.mubr.bf16.mxu0 %v3163_v25  ;;  %3606 = vmatprep.mubr.bf16.mxu1 %v3165_v26 }
 0x20c   : > { %v4223_v37 = vadd.f32 %v2611_v35, %v5864_v39  ;;  %v4255_v38 = vadd.f32 %v3063_v36, %v5866_v40  ;;  %v2613_v43 = vpop.f32.mrb[27].mxu0  ;;  %v3065_v44 = vpop.f32.mrb[27].mxu1  ;;  %3510 = vmatmul.mubr.bf16.gmra.mrb[52].mxu0 %v3162_v23  ;;  %3607 = vmatmul.mubr.bf16.gmra.mrb[52].mxu1 %v3164_v24  ;;  %v3126_v47 = vmax.f32 %v4221_v29, 0.0  ;;  %v3128_v48 = vmax.f32 %v4253_v30, 0.0 }
 0x20d   : > { %v4224_v45 = vadd.f32 %v2613_v43, %v5868_v41  ;;  %v4256_v46 = vadd.f32 %v3065_v44, %v5870_v42  ;;  %v3127_v51 = vmax.f32 %v4222_v33, 0.0  ;;  %v3129_v52 = vmax.f32 %v4254_v34, 0.0 }
 0x20e   : > { %v3130_v49 = vmax.f32 %v4223_v37, 0.0  ;;  %v3132_v50 = vmax.f32 %v4255_v38, 0.0 }
 0x20f   : > { %v3131_v53 = vmax.f32 %v4224_v45, 0.0  ;;  %v3133_v54 = vmax.f32 %v4256_v46, 0.0 }
 0x210   : > { %v3166_v55 = vpack.c.bf16 %v3130_v49, %v3126_v47  ;;  %v3168_v56 = vpack.c.bf16 %v3132_v50, %v3128_v48 }
 0x211   : > { %v3167_v57 = vpack.c.bf16 %v3131_v53, %v3127_v51  ;;  %v3169_v58 = vpack.c.bf16 %v3133_v54, %v3129_v52  ;;  %v2617_v59 = vpop.f32.mrb[28].mxu0  ;;  %v3069_v60 = vpop.f32.mrb[28].mxu1 }
 0x212   : > { %v4225_v61 = vadd.f32 %v2617_v59, %v5864_v39  ;;  %v4257_v62 = vadd.f32 %v3069_v60, %v5866_v40  ;;  %v2619_v63 = vpop.f32.mrb[29].mxu0  ;;  %v3071_v0 = vpop.f32.mrb[29].mxu1 }
 0x213   : > { %v4226_v1 = vadd.f32 %v2619_v63, %v5868_v41  ;;  %v4258_v2 = vadd.f32 %v3071_v0, %v5870_v42  ;;  %v2621_v3 = vpop.f32.mrb[30].mxu0  ;;  %v3073_v4 = vpop.f32.mrb[30].mxu1  ;;  %3517 = vmatprep.mubr.bf16.mxu0 %v3167_v57  ;;  %3614 = vmatprep.mubr.bf16.mxu1 %v3169_v58 }
 0x214   : > { %v4227_v5 = vadd.f32 %v2621_v3, %v5864_v39  ;;  %v4259_v6 = vadd.f32 %v3073_v4, %v5866_v40  ;;  %v2623_v7 = vpop.f32.mrb[31].mxu0  ;;  %v3075_v8 = vpop.f32.mrb[31].mxu1  ;;  %3518 = vmatmul.mubr.bf16.gmra.mrb[56].mxu0 %v3166_v55  ;;  %3615 = vmatmul.mubr.bf16.gmra.mrb[56].mxu1 %v3168_v56  ;;  %v3134_v11 = vmax.f32 %v4225_v61, 0.0  ;;  %v3136_v12 = vmax.f32 %v4257_v62, 0.0 }
 0x215   : > { %v4228_v9 = vadd.f32 %v2623_v7, %v5868_v41  ;;  %v4260_v10 = vadd.f32 %v3075_v8, %v5870_v42  ;;  %v3135_v15 = vmax.f32 %v4226_v1, 0.0  ;;  %v3137_v16 = vmax.f32 %v4258_v2, 0.0  ;;  %v5939_v42 = vld [vmem:[%s5986_s4] ss:$0 sm:$0xff] }
 0x216   : > { %v3138_v13 = vmax.f32 %v4227_v5, 0.0  ;;  %v3140_v14 = vmax.f32 %v4259_v6, 0.0 }
 0x217   : > { %v3139_v17 = vmax.f32 %v4228_v9, 0.0  ;;  %v3141_v18 = vmax.f32 %v4260_v10, 0.0 }
 0x218   : > { %v3170_v39 = vpack.c.bf16 %v3138_v13, %v3134_v11  ;;  %v3172_v19 = vpack.c.bf16 %v3140_v14, %v3136_v12 }
 0x219   : > { %v3171_v40 = vpack.c.bf16 %v3139_v17, %v3135_v15  ;;  %v3173_v20 = vpack.c.bf16 %v3141_v18, %v3137_v16 }
 0x21b   : > { %3525 = vmatprep.mubr.bf16.mxu0 %v3171_v40  ;;  %3622 = vmatprep.mubr.bf16.mxu1 %v3173_v20 }
 0x21c   : > { %3526 = vmatmul.mubr.bf16.gmra.mrb[60].mxu0 %v3170_v39  ;;  %3623 = vmatmul.mubr.bf16.gmra.mrb[60].mxu1 %v3172_v19 }
 0x2b7   : > { %v4085_v41 = vpop.f32.mrb[32].mxu0  ;;  %v4149_v21 = vpop.f32.mrb[32].mxu1 }
 0x2b8   : > { %v4086_v22 = vpop.f32.mrb[33].mxu0  ;;  %v4150_v23 = vpop.f32.mrb[33].mxu1 }
 0x2b9   : > { %v4087_v24 = vadd.f32 %v4086_v22, %v4085_v41  ;;  %v4151_v25 = vadd.f32 %v4150_v23, %v4149_v21  ;;  %v4088_v26 = vpop.f32.mrb[34].mxu0  ;;  %v4152_v27 = vpop.f32.mrb[34].mxu1 }
 0x2ba   : > { %v4089_v28 = vpop.f32.mrb[35].mxu0  ;;  %v4153_v29 = vpop.f32.mrb[35].mxu1 }
 0x2bb   : > { %v3472_v30 = vadd.f32 %v4087_v24, %v5939_v42  ;;  %v4090_v31 = vadd.f32 %v4089_v28, %v4088_v26  ;;  %v4154_v32 = vadd.f32 %v4153_v29, %v4152_v27 }
 0x2bd   : > { %v3569_v33 = vadd.f32 %v4151_v25, %v3472_v30  ;;  %v3475_v34 = vadd.f32 %v4090_v31, %v5939_v42 }
 0x2bf   : > { %3631 = vst [vmem:[%s5946_s30] sm:$0xff] %v3569_v33  ;;  %v3572_v35 = vadd.f32 %v4154_v32, %v3475_v34  ;;  %v4091_v36 = vpop.f32.mrb[36].mxu0  ;;  %v4155_v37 = vpop.f32.mrb[36].mxu1 }
 0x2c0   : > { %v4092_v38 = vpop.f32.mrb[37].mxu0  ;;  %v4156_v43 = vpop.f32.mrb[37].mxu1 }
 0x2c1   : > { %3632 = vst [vmem:[%s5946_s30 + $0x8] sm:$0xff] %v3572_v35  ;;  %v4093_v44 = vadd.f32 %v4092_v38, %v4091_v36  ;;  %v4157_v45 = vadd.f32 %v4156_v43, %v4155_v37  ;;  %v4094_v46 = vpop.f32.mrb[38].mxu0  ;;  %v4158_v47 = vpop.f32.mrb[38].mxu1 }
 0x2c2   : > { %v4095_v48 = vpop.f32.mrb[39].mxu0  ;;  %v4159_v49 = vpop.f32.mrb[39].mxu1 }
 0x2c3   : > { %v3480_v50 = vadd.f32 %v4093_v44, %v5939_v42  ;;  %v4096_v51 = vadd.f32 %v4095_v48, %v4094_v46  ;;  %v4160_v52 = vadd.f32 %v4159_v49, %v4158_v47 }
 0x2c5   : > { %v3577_v53 = vadd.f32 %v4157_v45, %v3480_v50  ;;  %v3483_v54 = vadd.f32 %v4096_v51, %v5939_v42 }
 0x2c7   : > { %3633 = vst [vmem:[%s5946_s30 + $0x10] sm:$0xff] %v3577_v53  ;;  %v3580_v55 = vadd.f32 %v4160_v52, %v3483_v54  ;;  %v4097_v56 = vpop.f32.mrb[40].mxu0  ;;  %v4161_v57 = vpop.f32.mrb[40].mxu1 }
 0x2c8   : > { %v4098_v58 = vpop.f32.mrb[41].mxu0  ;;  %v4162_v59 = vpop.f32.mrb[41].mxu1 }
 0x2c9   : > { %3634 = vst [vmem:[%s5946_s30 + $0x18] sm:$0xff] %v3580_v55  ;;  %v4099_v60 = vadd.f32 %v4098_v58, %v4097_v56  ;;  %v4163_v61 = vadd.f32 %v4162_v59, %v4161_v57  ;;  %v4100_v62 = vpop.f32.mrb[42].mxu0  ;;  %v4164_v63 = vpop.f32.mrb[42].mxu1 }
 0x2ca   : > { %v4101_v0 = vpop.f32.mrb[43].mxu0  ;;  %v4165_v1 = vpop.f32.mrb[43].mxu1 }
 0x2cb   : > { %v3488_v2 = vadd.f32 %v4099_v60, %v5939_v42  ;;  %v4102_v3 = vadd.f32 %v4101_v0, %v4100_v62  ;;  %v4166_v4 = vadd.f32 %v4165_v1, %v4164_v63 }
 0x2cd   : > { %v3585_v5 = vadd.f32 %v4163_v61, %v3488_v2  ;;  %v3491_v6 = vadd.f32 %v4102_v3, %v5939_v42 }
 0x2cf   : > { %3635 = vst [vmem:[%s5946_s30 + $0x20] sm:$0xff] %v3585_v5  ;;  %v3588_v7 = vadd.f32 %v4166_v4, %v3491_v6  ;;  %v4103_v8 = vpop.f32.mrb[44].mxu0  ;;  %v4167_v9 = vpop.f32.mrb[44].mxu1 }
 0x2d0   : > { %v4104_v10 = vpop.f32.mrb[45].mxu0  ;;  %v4168_v11 = vpop.f32.mrb[45].mxu1 }
 0x2d1   : > { %3636 = vst [vmem:[%s5946_s30 + $0x28] sm:$0xff] %v3588_v7  ;;  %v4105_v12 = vadd.f32 %v4104_v10, %v4103_v8  ;;  %v4169_v13 = vadd.f32 %v4168_v11, %v4167_v9  ;;  %v4106_v14 = vpop.f32.mrb[46].mxu0  ;;  %v4170_v15 = vpop.f32.mrb[46].mxu1 }
 0x2d2   : > { %v4107_v16 = vpop.f32.mrb[47].mxu0  ;;  %v4171_v17 = vpop.f32.mrb[47].mxu1 }
 0x2d3   : > { %v3496_v18 = vadd.f32 %v4105_v12, %v5939_v42  ;;  %v4108_v39 = vadd.f32 %v4107_v16, %v4106_v14  ;;  %v4172_v19 = vadd.f32 %v4171_v17, %v4170_v15 }
 0x2d5   : > { %v3593_v40 = vadd.f32 %v4169_v13, %v3496_v18  ;;  %v3499_v20 = vadd.f32 %v4108_v39, %v5939_v42 }
 0x2d7   : > { %3637 = vst [vmem:[%s5946_s30 + $0x30] sm:$0xff] %v3593_v40  ;;  %v3596_v41 = vadd.f32 %v4172_v19, %v3499_v20  ;;  %v4109_v21 = vpop.f32.mrb[48].mxu0  ;;  %v4173_v22 = vpop.f32.mrb[48].mxu1 }
 0x2d8   : > { %v4110_v23 = vpop.f32.mrb[49].mxu0  ;;  %v4174_v24 = vpop.f32.mrb[49].mxu1 }
 0x2d9   : > { %3638 = vst [vmem:[%s5946_s30 + $0x38] sm:$0xff] %v3596_v41  ;;  %v4111_v25 = vadd.f32 %v4110_v23, %v4109_v21  ;;  %v4175_v26 = vadd.f32 %v4174_v24, %v4173_v22  ;;  %v4112_v27 = vpop.f32.mrb[50].mxu0  ;;  %v4176_v28 = vpop.f32.mrb[50].mxu1 }
 0x2da   : > { %v4113_v29 = vpop.f32.mrb[51].mxu0  ;;  %v4177_v30 = vpop.f32.mrb[51].mxu1 }
 0x2db   : > { %v3504_v31 = vadd.f32 %v4111_v25, %v5939_v42  ;;  %v4114_v32 = vadd.f32 %v4113_v29, %v4112_v27  ;;  %v4178_v33 = vadd.f32 %v4177_v30, %v4176_v28 }
 0x2dd   : > { %v3601_v34 = vadd.f32 %v4175_v26, %v3504_v31  ;;  %v3507_v35 = vadd.f32 %v4114_v32, %v5939_v42 }
 0x2df   : > { %3639 = vst [vmem:[%s5946_s30 + $0x40] sm:$0xff] %v3601_v34  ;;  %v3604_v36 = vadd.f32 %v4178_v33, %v3507_v35  ;;  %v4115_v37 = vpop.f32.mrb[52].mxu0  ;;  %v4179_v38 = vpop.f32.mrb[52].mxu1 }
 0x2e0   : > { %v4116_v43 = vpop.f32.mrb[53].mxu0  ;;  %v4180_v44 = vpop.f32.mrb[53].mxu1 }
 0x2e1   : > { %3640 = vst [vmem:[%s5946_s30 + $0x48] sm:$0xff] %v3604_v36  ;;  %v4117_v45 = vadd.f32 %v4116_v43, %v4115_v37  ;;  %v4181_v46 = vadd.f32 %v4180_v44, %v4179_v38  ;;  %v4118_v47 = vpop.f32.mrb[54].mxu0  ;;  %v4182_v48 = vpop.f32.mrb[54].mxu1 }
 0x2e2   : > { %v4119_v49 = vpop.f32.mrb[55].mxu0  ;;  %v4183_v50 = vpop.f32.mrb[55].mxu1 }
 0x2e3   : > { %v3512_v51 = vadd.f32 %v4117_v45, %v5939_v42  ;;  %v4120_v52 = vadd.f32 %v4119_v49, %v4118_v47  ;;  %v4184_v53 = vadd.f32 %v4183_v50, %v4182_v48 }
 0x2e5   : > { %v3609_v54 = vadd.f32 %v4181_v46, %v3512_v51  ;;  %v3515_v55 = vadd.f32 %v4120_v52, %v5939_v42 }
 0x2e7   : > { %3641 = vst [vmem:[%s5946_s30 + $0x50] sm:$0xff] %v3609_v54  ;;  %v3612_v56 = vadd.f32 %v4184_v53, %v3515_v55  ;;  %v4121_v57 = vpop.f32.mrb[56].mxu0  ;;  %v4185_v58 = vpop.f32.mrb[56].mxu1 }
 0x2e8   : > { %v4122_v59 = vpop.f32.mrb[57].mxu0  ;;  %v4186_v60 = vpop.f32.mrb[57].mxu1 }
 0x2e9   : > { %3642 = vst [vmem:[%s5946_s30 + $0x58] sm:$0xff] %v3612_v56  ;;  %v4123_v61 = vadd.f32 %v4122_v59, %v4121_v57  ;;  %v4187_v62 = vadd.f32 %v4186_v60, %v4185_v58  ;;  %v4124_v63 = vpop.f32.mrb[58].mxu0  ;;  %v4188_v0 = vpop.f32.mrb[58].mxu1 }
 0x2ea   : > { %v4125_v1 = vpop.f32.mrb[59].mxu0  ;;  %v4189_v2 = vpop.f32.mrb[59].mxu1 }
 0x2eb   : > { %v3520_v3 = vadd.f32 %v4123_v61, %v5939_v42  ;;  %v4126_v4 = vadd.f32 %v4125_v1, %v4124_v63  ;;  %v4190_v5 = vadd.f32 %v4189_v2, %v4188_v0 }
 0x2ed   : > { %v3617_v6 = vadd.f32 %v4187_v62, %v3520_v3  ;;  %v3523_v7 = vadd.f32 %v4126_v4, %v5939_v42 }
 0x2ef   : > { %3643 = vst [vmem:[%s5946_s30 + $0x60] sm:$0xff] %v3617_v6  ;;  %v3620_v8 = vadd.f32 %v4190_v5, %v3523_v7  ;;  %v4127_v9 = vpop.f32.mrb[60].mxu0  ;;  %v4191_v10 = vpop.f32.mrb[60].mxu1 }
 0x2f0   : > { %v4128_v11 = vpop.f32.mrb[61].mxu0  ;;  %v4192_v12 = vpop.f32.mrb[61].mxu1 }
 0x2f1   : > { %3644 = vst [vmem:[%s5946_s30 + $0x68] sm:$0xff] %v3620_v8  ;;  %v4129_v13 = vadd.f32 %v4128_v11, %v4127_v9  ;;  %v4193_v14 = vadd.f32 %v4192_v12, %v4191_v10  ;;  %v4130_v15 = vpop.f32.mrb[62].mxu0  ;;  %v4194_v16 = vpop.f32.mrb[62].mxu1 }
 0x2f2   : > { %v4131_v17 = vpop.f32.mrb[63].mxu0  ;;  %v4195_v18 = vpop.f32.mrb[63].mxu1 }
 0x2f3   : > { %v3528_v39 = vadd.f32 %v4129_v13, %v5939_v42  ;;  %v4132_v19 = vadd.f32 %v4131_v17, %v4130_v15  ;;  %v4196_v40 = vadd.f32 %v4195_v18, %v4194_v16 }
 0x2f5   : > { %v3625_v20 = vadd.f32 %v4193_v14, %v3528_v39  ;;  %v3531_v41 = vadd.f32 %v4132_v19, %v5939_v42 }
 0x2f7   : > { %3645 = vst [vmem:[%s5946_s30 + $0x70] sm:$0xff] %v3625_v20  ;;  %v3628_v21 = vadd.f32 %v4196_v40, %v3531_v41 }
 0x2f9   : > { %3646 = vst [vmem:[%s5946_s30 + $0x78] sm:$0xff] %v3628_v21 }
 0x2fa PF: > { %s15_s18 = sadd.s32 1, %s4883_s18  }
 0x2fb   : > { %p12_p4 = scmp.ge.s32.totalorder %s15_s18, 4  }
 0x2fd   :  { %14 = sbr.rel (!%p12_p4) target bundleno = 1 (0x1), region = 70 }

</bundles_post_ra>
